<compile_context>
chip_gen: v7x
topology: tpu7x:2x2x1
jax: 0.10.0
libtpu: 0.0.40
codegen_flags: <defaults>
</compile_context>

<pallas_src>
import jax
import jax.numpy as jnp
from jax.experimental import pallas as pl
from jax.experimental.pallas import tpu as pltpu


# ------------------------------ fused MLP kernel -----------------------------

def _fc_kernel(x_ref, w1_ref, b1_ref, w2_ref, b2_ref, w3_ref, b3_ref,
               w4_ref, b4_ref, h_ref, out_ref):
    """Whole MLP forward for one batch tile, entirely in VMEM."""

    def dense(a_f32, w_ref, b_ref, relu):
        acc = jnp.dot(a_f32.astype(jnp.bfloat16), w_ref[...],
                      preferred_element_type=jnp.float32)     # MXU, f32 acc
        acc = acc + b_ref[...]                                 # f32 VPU
        if relu:
            acc = jnp.maximum(acc, 0.0)
        return acc

    # TODO(synk): nn.Dropout(p=0.2) is treated as eval-mode identity (inference).
    h = dense(x_ref[...], w1_ref, b1_ref, relu=True)           # (TB, 512)
    h = dense(h,          w2_ref, b2_ref, relu=True)           # (TB, 256)
    h = dense(h,          w3_ref, b3_ref, relu=True)           # (TB, 128)
    h_ref[...] = h                                             # returned hidden
    out_ref[...] = dense(h, w4_ref, b4_ref, relu=False)        # (TB, classes)


def fc_forward(x, params, *, max_batch_tile=512):
    """x: (B, 1080) f32  ->  (hidden (B, 128) f32, logits (B, classes) f32)."""
    (w1, b1), (w2, b2), (w3, b3), (w4, b4) = params
    B, f_in = x.shape
    assert f_in == w1.shape[0]
    hdim = w3.shape[1]
    classes = w4.shape[1]

    # Batch tiling: one grid step for small B; `max_batch_tile`-row tiles
    # (multiple of 8 sublanes) for large B.  Each tile still runs the whole
    # fused network in one grid step.
    if B <= max_batch_tile:
        tb, bp = B, B
    else:
        tb = max_batch_tile
        bp = pl.cdiv(B, tb) * tb
    xp = jnp.pad(x, ((0, bp - B), (0, 0))) if bp != B else x

    def full(shape):
        return pl.BlockSpec(shape, lambda i: (0,) * len(shape))

    hidden, logits = pl.pallas_call(
        _fc_kernel,
        grid=(bp // tb,),
        in_specs=[
            pl.BlockSpec((tb, f_in), lambda i: (i, 0)),
            full(w1.shape), full(b1.shape),
            full(w2.shape), full(b2.shape),
            full(w3.shape), full(b3.shape),
            full(w4.shape), full(b4.shape),
        ],
        out_specs=(
            pl.BlockSpec((tb, hdim), lambda i: (i, 0)),
            pl.BlockSpec((tb, classes), lambda i: (i, 0)),
        ),
        out_shape=(
            jax.ShapeDtypeStruct((bp, hdim), jnp.float32),
            jax.ShapeDtypeStruct((bp, classes), jnp.float32),
        ),
        compiler_params=pltpu.CompilerParams(
            dimension_semantics=("parallel",)),
    )(xp, w1, b1, w2, b2, w3, b3, w4, b4)

    if bp != B:
        hidden, logits = hidden[:B], logits[:B]
    return hidden, logits


# --------------------------------- parameters --------------------------------

def init_params(key, classes):
    """Weights in bf16 (MXU operands), biases in f32, bias reshaped to (1, O)."""
    dims = [(1080, 512), (512, 256), (256, 128), (128, classes)]
    ks = jax.random.split(key, 2 * len(dims))
    params = []
    for i, (fi, fo) in enumerate(dims):
        w = (jax.random.normal(ks[2 * i], (fi, fo), jnp.float32)
             / jnp.sqrt(float(fi))).astype(jnp.bfloat16)
        b = 0.01 * jax.random.normal(ks[2 * i + 1], (fo,), jnp.float32)
        params.append((w, b.reshape(1, fo)))
    return params


# ------------------------------------ main ------------------------------------

if __name__ == "__main__":
    B, classes = 2, 8                       # small batch; PAMAP-style class count
    key = jax.random.PRNGKey(0)
    kx, kp = jax.random.split(key)

    params = init_params(kp, classes)
    x = jax.random.normal(kx, (B, 1080), jnp.float32)

    hidden, logits = jax.jit(fc_forward)(x, params)
    jax.block_until_ready((hidden, logits))

    assert hidden.shape == (B, 128) and logits.shape == (B, classes)
    assert bool(jnp.all(jnp.isfinite(hidden))) and bool(jnp.all(jnp.isfinite(logits)))
    print("KERNEL_OK")
</pallas_src>

<mosaic_0001>
module attributes {stable_mosaic.version = 11 : i64} {
  func.func @_fc_kernel(%arg0: i32, %arg1: memref<2x1080xf32, #tpu.memory_space<vmem>>, %arg2: memref<1080x512xbf16, #tpu.memory_space<vmem>>, %arg3: memref<1x512xf32, #tpu.memory_space<vmem>>, %arg4: memref<512x256xbf16, #tpu.memory_space<vmem>>, %arg5: memref<1x256xf32, #tpu.memory_space<vmem>>, %arg6: memref<256x128xbf16, #tpu.memory_space<vmem>>, %arg7: memref<1x128xf32, #tpu.memory_space<vmem>>, %arg8: memref<128x8xbf16, #tpu.memory_space<vmem>>, %arg9: memref<1x8xf32, #tpu.memory_space<vmem>>, %arg10: memref<2x128xf32, #tpu.memory_space<vmem>>, %arg11: memref<2x8xf32, #tpu.memory_space<vmem>>) attributes {dimension_semantics = [#tpu.dimension_semantics<parallel>], iteration_bounds = array<i64: 1>, scalar_prefetch = 0 : i64, scratch_operands = 0 : i64, tpu.core_type = #tpu.core_type<tc>, window_params = [{transform_indices = @transform_0, window_bounds = array<i64: 2, 1080>}, {pipeline_mode = #tpu.pipeline_mode<synchronous>, transform_indices = @transform_1, window_bounds = array<i64: 1080, 512>}, {pipeline_mode = #tpu.pipeline_mode<synchronous>, transform_indices = @transform_2, window_bounds = array<i64: 1, 512>}, {pipeline_mode = #tpu.pipeline_mode<synchronous>, transform_indices = @transform_3, window_bounds = array<i64: 512, 256>}, {pipeline_mode = #tpu.pipeline_mode<synchronous>, transform_indices = @transform_4, window_bounds = array<i64: 1, 256>}, {pipeline_mode = #tpu.pipeline_mode<synchronous>, transform_indices = @transform_5, window_bounds = array<i64: 256, 128>}, {pipeline_mode = #tpu.pipeline_mode<synchronous>, transform_indices = @transform_6, window_bounds = array<i64: 1, 128>}, {pipeline_mode = #tpu.pipeline_mode<synchronous>, transform_indices = @transform_7, window_bounds = array<i64: 128, 8>}, {pipeline_mode = #tpu.pipeline_mode<synchronous>, transform_indices = @transform_8, window_bounds = array<i64: 1, 8>}, {transform_indices = @transform_9, window_bounds = array<i64: 2, 128>}, {transform_indices = @transform_10, window_bounds = array<i64: 2, 8>}]} {
    %c0 = arith.constant 0 : index
    %c0_0 = arith.constant 0 : index
    %0 = vector.load %arg1[%c0, %c0_0] : memref<2x1080xf32, #tpu.memory_space<vmem>>, vector<2x1080xf32>
    %1 = arith.truncf %0 : vector<2x1080xf32> to vector<2x1080xbf16>
    %c0_1 = arith.constant 0 : index
    %c0_2 = arith.constant 0 : index
    %2 = vector.load %arg2[%c0_1, %c0_2] : memref<1080x512xbf16, #tpu.memory_space<vmem>>, vector<1080x512xbf16>
    %cst = arith.constant dense<0.000000e+00> : vector<2x512xf32>
    %3 = tpu.matmul %1, %2, %cst {dimension_numbers = #tpu.dot_dimension_numbers<[1], [0], [0], [1], [0, 0, 1, 1], [], []>} : vector<2x1080xbf16>, vector<1080x512xbf16>, vector<2x512xf32> -> vector<2x512xf32>
    %c0_3 = arith.constant 0 : index
    %c0_4 = arith.constant 0 : index
    %4 = vector.load %arg3[%c0_3, %c0_4] : memref<1x512xf32, #tpu.memory_space<vmem>>, vector<1x512xf32>
    %5 = vector.broadcast %4 : vector<1x512xf32> to vector<2x512xf32>
    %6 = arith.addf %3, %5 : vector<2x512xf32>
    %cst_5 = arith.constant 0.000000e+00 : f32
    %7 = vector.broadcast %cst_5 : f32 to vector<2x512xf32>
    %8 = arith.maximumf %6, %7 : vector<2x512xf32>
    %9 = arith.truncf %8 : vector<2x512xf32> to vector<2x512xbf16>
    %c0_6 = arith.constant 0 : index
    %c0_7 = arith.constant 0 : index
    %10 = vector.load %arg4[%c0_6, %c0_7] : memref<512x256xbf16, #tpu.memory_space<vmem>>, vector<512x256xbf16>
    %cst_8 = arith.constant dense<0.000000e+00> : vector<2x256xf32>
    %11 = tpu.matmul %9, %10, %cst_8 {dimension_numbers = #tpu.dot_dimension_numbers<[1], [0], [0], [1], [0, 0, 1, 1], [], []>} : vector<2x512xbf16>, vector<512x256xbf16>, vector<2x256xf32> -> vector<2x256xf32>
    %c0_9 = arith.constant 0 : index
    %c0_10 = arith.constant 0 : index
    %12 = vector.load %arg5[%c0_9, %c0_10] : memref<1x256xf32, #tpu.memory_space<vmem>>, vector<1x256xf32>
    %13 = vector.broadcast %12 : vector<1x256xf32> to vector<2x256xf32>
    %14 = arith.addf %11, %13 : vector<2x256xf32>
    %cst_11 = arith.constant 0.000000e+00 : f32
    %15 = vector.broadcast %cst_11 : f32 to vector<2x256xf32>
    %16 = arith.maximumf %14, %15 : vector<2x256xf32>
    %17 = arith.truncf %16 : vector<2x256xf32> to vector<2x256xbf16>
    %c0_12 = arith.constant 0 : index
    %c0_13 = arith.constant 0 : index
    %18 = vector.load %arg6[%c0_12, %c0_13] : memref<256x128xbf16, #tpu.memory_space<vmem>>, vector<256x128xbf16>
    %cst_14 = arith.constant dense<0.000000e+00> : vector<2x128xf32>
    %19 = tpu.matmul %17, %18, %cst_14 {dimension_numbers = #tpu.dot_dimension_numbers<[1], [0], [0], [1], [0, 0, 1, 1], [], []>} : vector<2x256xbf16>, vector<256x128xbf16>, vector<2x128xf32> -> vector<2x128xf32>
    %c0_15 = arith.constant 0 : index
    %c0_16 = arith.constant 0 : index
    %20 = vector.load %arg7[%c0_15, %c0_16] : memref<1x128xf32, #tpu.memory_space<vmem>>, vector<1x128xf32>
    %21 = vector.broadcast %20 : vector<1x128xf32> to vector<2x128xf32>
    %22 = arith.addf %19, %21 : vector<2x128xf32>
    %cst_17 = arith.constant 0.000000e+00 : f32
    %23 = vector.broadcast %cst_17 : f32 to vector<2x128xf32>
    %24 = arith.maximumf %22, %23 : vector<2x128xf32>
    %c0_18 = arith.constant 0 : index
    %c0_19 = arith.constant 0 : index
    %25 = vector.load %arg10[%c0_18, %c0_19] : memref<2x128xf32, #tpu.memory_space<vmem>>, vector<2x128xf32>
    tpu.vector_store %arg10[%c0_18, %c0_19], %24 {strides = array<i32>} : memref<2x128xf32, #tpu.memory_space<vmem>>, vector<2x128xf32>,
    %26 = arith.truncf %24 : vector<2x128xf32> to vector<2x128xbf16>
    %c0_20 = arith.constant 0 : index
    %c0_21 = arith.constant 0 : index
    %27 = vector.load %arg8[%c0_20, %c0_21] : memref<128x8xbf16, #tpu.memory_space<vmem>>, vector<128x8xbf16>
    %cst_22 = arith.constant dense<0.000000e+00> : vector<2x8xf32>
    %28 = tpu.matmul %26, %27, %cst_22 {dimension_numbers = #tpu.dot_dimension_numbers<[1], [0], [0], [1], [0, 0, 1, 1], [], []>} : vector<2x128xbf16>, vector<128x8xbf16>, vector<2x8xf32> -> vector<2x8xf32>
    %c0_23 = arith.constant 0 : index
    %c0_24 = arith.constant 0 : index
    %29 = vector.load %arg9[%c0_23, %c0_24] : memref<1x8xf32, #tpu.memory_space<vmem>>, vector<1x8xf32>
    %30 = vector.broadcast %29 : vector<1x8xf32> to vector<2x8xf32>
    %31 = arith.addf %28, %30 : vector<2x8xf32>
    %c0_25 = arith.constant 0 : index
    %c0_26 = arith.constant 0 : index
    %32 = vector.load %arg11[%c0_25, %c0_26] : memref<2x8xf32, #tpu.memory_space<vmem>>, vector<2x8xf32>
    tpu.vector_store %arg11[%c0_25, %c0_26], %31 {strides = array<i32>} : memref<2x8xf32, #tpu.memory_space<vmem>>, vector<2x8xf32>,
    return
  }
  func.func @transform_0(%arg0: i32) -> (i32, i32) {
    %c0_i32 = arith.constant 0 : i32
    %c0_i32_0 = arith.constant 0 : i32
    return %arg0, %c0_i32 : i32, i32
  }
  func.func @transform_1(%arg0: i32) -> (i32, i32) {
    %c0_i32 = arith.constant 0 : i32
    %c0_i32_0 = arith.constant 0 : i32
    %c0_i32_1 = arith.constant 0 : i32
    return %c0_i32, %c0_i32_0 : i32, i32
  }
  func.func @transform_2(%arg0: i32) -> (i32, i32) {
    %c0_i32 = arith.constant 0 : i32
    %c0_i32_0 = arith.constant 0 : i32
    %c0_i32_1 = arith.constant 0 : i32
    return %c0_i32, %c0_i32_0 : i32, i32
  }
  func.func @transform_3(%arg0: i32) -> (i32, i32) {
    %c0_i32 = arith.constant 0 : i32
    %c0_i32_0 = arith.constant 0 : i32
    %c0_i32_1 = arith.constant 0 : i32
    return %c0_i32, %c0_i32_0 : i32, i32
  }
  func.func @transform_4(%arg0: i32) -> (i32, i32) {
    %c0_i32 = arith.constant 0 : i32
    %c0_i32_0 = arith.constant 0 : i32
    %c0_i32_1 = arith.constant 0 : i32
    return %c0_i32, %c0_i32_0 : i32, i32
  }
  func.func @transform_5(%arg0: i32) -> (i32, i32) {
    %c0_i32 = arith.constant 0 : i32
    %c0_i32_0 = arith.constant 0 : i32
    %c0_i32_1 = arith.constant 0 : i32
    return %c0_i32, %c0_i32_0 : i32, i32
  }
  func.func @transform_6(%arg0: i32) -> (i32, i32) {
    %c0_i32 = arith.constant 0 : i32
    %c0_i32_0 = arith.constant 0 : i32
    %c0_i32_1 = arith.constant 0 : i32
    return %c0_i32, %c0_i32_0 : i32, i32
  }
  func.func @transform_7(%arg0: i32) -> (i32, i32) {
    %c0_i32 = arith.constant 0 : i32
    %c0_i32_0 = arith.constant 0 : i32
    %c0_i32_1 = arith.constant 0 : i32
    return %c0_i32, %c0_i32_0 : i32, i32
  }
  func.func @transform_8(%arg0: i32) -> (i32, i32) {
    %c0_i32 = arith.constant 0 : i32
    %c0_i32_0 = arith.constant 0 : i32
    %c0_i32_1 = arith.constant 0 : i32
    return %c0_i32, %c0_i32_0 : i32, i32
  }
  func.func @transform_9(%arg0: i32) -> (i32, i32) {
    %c0_i32 = arith.constant 0 : i32
    %c0_i32_0 = arith.constant 0 : i32
    return %arg0, %c0_i32 : i32, i32
  }
  func.func @transform_10(%arg0: i32) -> (i32, i32) {
    %c0_i32 = arith.constant 0 : i32
    %c0_i32_0 = arith.constant 0 : i32
    return %arg0, %c0_i32 : i32, i32
  }
}

</mosaic_0001>

<bundles_post_ra>
// kernel: fc_forward.1
= control target key start
LH: loop header
LB: loop body
LE: loop exit
PB: predicated region body
PF: predicated region fallthrough
CT: control target
= control target key end

     0   :  { %16 = vsyncpa [#allocation3], 0  ;;  %s4611_s0 = inlined_call_operand.hbm [shape: f32[2,1080], index: 0, kind: input, shape index: {}]   ;;  %s4612_s1 = inlined_call_operand.hbm [shape: bf16[1080,512], index: 1, kind: input, shape index: {}]   ;;  %s4613_s2 = inlined_call_operand.hbm [shape: f32[1,512], index: 2, kind: input, shape index: {}]   ;;  %s4614_s3 = inlined_call_operand.hbm [shape: bf16[512,256], index: 3, kind: input, shape index: {}]   ;;  %s4615_s4 = inlined_call_operand.hbm [shape: f32[1,256], index: 4, kind: input, shape index: {}]   ;;  %s4616_s5 = inlined_call_operand.hbm [shape: bf16[256,128], index: 5, kind: input, shape index: {}]   ;;  %s4617_s6 = inlined_call_operand.hbm [shape: f32[1,128], index: 6, kind: input, shape index: {}]   ;;  %s4618_s7 = inlined_call_operand.vmem [shape: bf16[128,8], index: 7, kind: input, shape index: {}]   ;;  %s4619_s8 = inlined_call_operand.hbm [shape: f32[1,8], index: 8, kind: input, shape index: {}]   ;;  %s4620_s9 = inlined_call_operand.hbm [shape: f32[2,128], index: 9, kind: output, shape index: {0}]   ;;  %s4621_s10 = inlined_call_operand.hbm [shape: f32[2,8], index: 10, kind: output, shape index: {1}]  }
   0x1   :  { %17 = vsyncpa [#allocation6], 0 }
   0x2   :  { %18 = vsyncpa [#allocation9], 0 }
   0x3   :  { %19 = vsyncpa [#allocation12], 0 }
   0x4   :  { %20 = vsyncpa [#allocation15], 0 }
   0x5   :  { %21 = vsyncpa [#allocation4], 0 }
   0x6   :  { %22 = vsyncpa [#allocation18], 0  ;;  %s4324_s13 = smov [#allocation5]   ;;  %s4090_s17 = scalar_lea.hbm %s4612_s1, 34560 }
   0x7   :  { %s38_s14 = sshll.u32 %s4324_s13, 4  ;;  %p4091_p0 = scmp.ne.s32.totalorder %s4612_s1, %s4090_s17  ;;  %s39_s14 = int_to_ptr.vmem [resolvable:$true] %s38_s14 }
   0x8   :  { %p4094_p1 = scmp.lt.u32.totalorder %s4090_s17, %s4612_s1 }
   0xa   :  { %p4096_p2 = pnand %p4094_p1, %p4091_p0 }
   0xc   :  { %4099 = shalt.err (!%p4096_p2)
}
   0xd   :  { %s4100_s22 = scalar_lea.vmem %s39_s14, 34560  ;;  %p4105_p4 = scmp.lt.s32.totalorder %s39_s14, %s39_s14 }
   0xe   :  { %p4101_p3 = scmp.ne.s32.totalorder %s39_s14, %s4100_s22  ;;  %p4106_p5 = scmp.lt.s32.totalorder %s4100_s22, %s4100_s22 }
  0x10   :  { %p4107_p6 = por %p4106_p5, %p4105_p4 }
  0x12   :  { %p4108_p7 = pnand %p4107_p6, %p4101_p3 }
  0x14   :  { %4111 = shalt.err (!%p4108_p7)
}
  0x15   :  { %s4325_s23 = smov 256   ;;  %s4326_s24 = smov 16  }
  0x16   :  { %44 = dma.hbm_to_vmem [thread:$0]  %s4612_s1, 34560, %s39_s14, [#allocation6], %s4325_s23, %s4325_s23, %s4326_s24  }
  0x17   :  { %s4327_s27 = smov [#allocation8]   ;;  %s4112_s11 = scalar_lea.hbm %s4614_s3, 8192 }
  0x18   :  { %s60_s28 = sshll.u32 %s4327_s27, 4  ;;  %p4113_p8 = scmp.ne.s32.totalorder %s4614_s3, %s4112_s11  ;;  %s61_s28 = int_to_ptr.vmem [resolvable:$true] %s60_s28 }
  0x19   :  { %p4116_p9 = scmp.lt.u32.totalorder %s4112_s11, %s4614_s3 }
  0x1b   :  { %p4118_p10 = pnand %p4116_p9, %p4113_p8 }
  0x1d   :  { %4121 = shalt.err (!%p4118_p10)
}
  0x1e   :  { %s4122_s17 = scalar_lea.vmem %s61_s28, 8192  ;;  %p4127_p12 = scmp.lt.s32.totalorder %s61_s28, %s61_s28 }
  0x1f   :  { %p4123_p11 = scmp.ne.s32.totalorder %s61_s28, %s4122_s17  ;;  %p4128_p13 = scmp.lt.s32.totalorder %s4122_s17, %s4122_s17 }
  0x21   :  { %p4129_p0 = por %p4128_p13, %p4127_p12 }
  0x23   :  { %p4130_p1 = pnand %p4129_p0, %p4123_p11 }
  0x25   :  { %4133 = shalt.err (!%p4130_p1)
}
  0x26   :  { %s4328_s1 = smov 128   ;;  %s4329_s14 = smov 8  }
  0x27   :  { %66 = dma.hbm_to_vmem [thread:$0]  %s4614_s3, 8192, %s61_s28, [#allocation9], %s4328_s1, %s4328_s1, %s4329_s14  }
  0x28   :  { %s4330_s20 = smov [#allocation11]   ;;  %s4134_s24 = scalar_lea.hbm %s4616_s5, 2048 }
  0x29   :  { %s82_s21 = sshll.u32 %s4330_s20, 4  ;;  %p4135_p2 = scmp.ne.s32.totalorder %s4616_s5, %s4134_s24  ;;  %s83_s21 = int_to_ptr.vmem [resolvable:$true] %s82_s21 }
  0x2a   :  { %p4138_p3 = scmp.lt.u32.totalorder %s4134_s24, %s4616_s5 }
  0x2c   :  { %p4140_p4 = pnand %p4138_p3, %p4135_p2 }
  0x2e   :  { %4143 = shalt.err (!%p4140_p4)
}
  0x2f   :  { %s4144_s30 = scalar_lea.vmem %s83_s21, 2048  ;;  %p4149_p6 = scmp.lt.s32.totalorder %s83_s21, %s83_s21 }
  0x30   :  { %p4145_p5 = scmp.ne.s32.totalorder %s83_s21, %s4144_s30  ;;  %p4150_p7 = scmp.lt.s32.totalorder %s4144_s30, %s4144_s30 }
  0x32   :  { %p4151_p8 = por %p4150_p7, %p4149_p6 }
  0x34   :  { %p4152_p9 = pnand %p4151_p8, %p4145_p5 }
  0x36   :  { %4155 = shalt.err (!%p4152_p9)
}
  0x37   :  { %s4331_s3 = smov 64   ;;  %s4332_s28 = smov 4  }
  0x38   :  { %88 = dma.hbm_to_vmem [thread:$0]  %s4616_s5, 2048, %s83_s21, [#allocation12], %s4331_s3, %s4331_s3, %s4332_s28  }
  0x39   :  { %s4333_s13 = smov [#allocation2]   ;;  %s4334_s16 = smov [#allocation7]  }
  0x3a   :  { %s29_s15 = sshll.u32 %s4333_s13, 4  ;;  %s51_s17 = sshll.u32 %s4334_s16, 4  ;;  %s30_s15 = int_to_ptr.vmem [resolvable:$true] %s29_s15  ;;  %s52_s17 = int_to_ptr.vmem [resolvable:$true] %s51_s17 }
  0x3b   :  { %s4156_s18 = scalar_lea.hbm %s4611_s0, 288 }
  0x3c   :  { %p4157_p10 = scmp.ne.s32.totalorder %s4611_s0, %s4156_s18  ;;  %p4160_p11 = scmp.lt.u32.totalorder %s4156_s18, %s4611_s0 }
  0x3e   :  { %p4162_p12 = pnand %p4160_p11, %p4157_p10 }
  0x40   :  { %4165 = shalt.err (!%p4162_p12)
}
  0x41   :  { %s4166_s5 = scalar_lea.vmem %s30_s15, 288  ;;  %p4171_p0 = scmp.lt.s32.totalorder %s30_s15, %s30_s15 }
  0x42   :  { %p4167_p13 = scmp.ne.s32.totalorder %s30_s15, %s4166_s5  ;;  %p4172_p1 = scmp.lt.s32.totalorder %s4166_s5, %s4166_s5 }
  0x44   :  { %p4173_p2 = por %p4172_p1, %p4171_p0 }
  0x46   :  { %p4174_p3 = pnand %p4173_p2, %p4167_p13 }
  0x48   :  { %4177 = shalt.err (!%p4174_p3)
}
  0x49   :  { %32 = dma.hbm_to_vmem [thread:$0]  %s4611_s0, 288, %s30_s15, [#allocation3]  }
  0x4a   :  { %s4178_s27 = scalar_lea.hbm %s4613_s2, 64 }
  0x4b   :  { %p4179_p4 = scmp.ne.s32.totalorder %s4613_s2, %s4178_s27  ;;  %p4182_p5 = scmp.lt.u32.totalorder %s4178_s27, %s4613_s2 }
  0x4d   :  { %p4184_p6 = pnand %p4182_p5, %p4179_p4 }
  0x4f   :  { %4187 = shalt.err (!%p4184_p6)
}
  0x50   :  { %s4188_s11 = scalar_lea.vmem %s52_s17, 64  ;;  %p4193_p8 = scmp.lt.s32.totalorder %s52_s17, %s52_s17 }
  0x51   :  { %p4189_p7 = scmp.ne.s32.totalorder %s52_s17, %s4188_s11  ;;  %p4194_p9 = scmp.lt.s32.totalorder %s4188_s11, %s4188_s11 }
  0x53   :  { %p4195_p10 = por %p4194_p9, %p4193_p8 }
  0x55   :  { %p4196_p11 = pnand %p4195_p10, %p4189_p7 }
  0x57   :  { %4199 = shalt.err (!%p4196_p11)
}
  0x58   :  { %54 = dma.hbm_to_vmem [thread:$0]  %s4613_s2, 64, %s52_s17, [#allocation6]  }
  0x59   :  { %s4335_s13 = smov [#allocation10]   ;;  %s4336_s16 = smov [#allocation13]  }
  0x5a   :  { %s73_s15 = sshll.u32 %s4335_s13, 4  ;;  %s95_s1 = sshll.u32 %s4336_s16, 4  ;;  %s74_s15 = int_to_ptr.vmem [resolvable:$true] %s73_s15  ;;  %s96_s1 = int_to_ptr.vmem [resolvable:$true] %s95_s1 }
  0x5b   :  { %s4200_s19 = scalar_lea.hbm %s4615_s4, 32 }
  0x5c   :  { %p4201_p12 = scmp.ne.s32.totalorder %s4615_s4, %s4200_s19  ;;  %p4204_p13 = scmp.lt.u32.totalorder %s4200_s19, %s4615_s4 }
  0x5e   :  { %p4206_p0 = pnand %p4204_p13, %p4201_p12 }
  0x60   :  { %4209 = shalt.err (!%p4206_p0)
}
  0x61   :  { %s4210_s2 = scalar_lea.vmem %s74_s15, 32  ;;  %p4215_p2 = scmp.lt.s32.totalorder %s74_s15, %s74_s15 }
  0x62   :  { %p4211_p1 = scmp.ne.s32.totalorder %s74_s15, %s4210_s2  ;;  %p4216_p3 = scmp.lt.s32.totalorder %s4210_s2, %s4210_s2 }
  0x64   :  { %p4217_p4 = por %p4216_p3, %p4215_p2 }
  0x66   :  { %p4218_p5 = pnand %p4217_p4, %p4211_p1 }
  0x68   :  { %4221 = shalt.err (!%p4218_p5)
}
  0x69   :  { %76 = dma.hbm_to_vmem [thread:$0]  %s4615_s4, 32, %s74_s15, [#allocation9]  }
  0x6a   :  { %s4222_s26 = scalar_lea.hbm %s4617_s6, 16 }
  0x6b   :  { %p4223_p6 = scmp.ne.s32.totalorder %s4617_s6, %s4222_s26  ;;  %p4226_p7 = scmp.lt.u32.totalorder %s4222_s26, %s4617_s6 }
  0x6d   :  { %p4228_p8 = pnand %p4226_p7, %p4223_p6 }
  0x6f   :  { %4231 = shalt.err (!%p4228_p8)
}
  0x70   :  { %s4232_s28 = scalar_lea.vmem %s96_s1, 16  ;;  %s4236_s11 = scalar_lea.vmem %s96_s1, 32 }
  0x71   :  { %p4233_p9 = scmp.ne.s32.totalorder %s96_s1, %s4232_s28  ;;  %p4237_p10 = scmp.lt.s32.totalorder %s96_s1, %s96_s1 }
  0x72   :  { %p4238_p11 = scmp.lt.s32.totalorder %s4236_s11, %s4232_s28 }
  0x74   :  { %p4239_p12 = por %p4238_p11, %p4237_p10 }
  0x76   :  { %p4240_p13 = pnand %p4239_p12, %p4233_p9 }
  0x78   :  { %4243 = shalt.err (!%p4240_p13)
}
  0x79   :  { %98 = dma.hbm_to_vmem [thread:$0]  %s4617_s6, 16, %s96_s1, [#allocation12]  }
  0x7a   :  { %s4337_s12 = smov [#allocation14]   ;;  %s4244_s14 = scalar_lea.hbm %s4619_s8, 16 }
  0x7b   :  { %s107_s13 = sshll.u32 %s4337_s12, 4  ;;  %p4245_p0 = scmp.ne.s32.totalorder %s4619_s8, %s4244_s14  ;;  %s108_s13 = int_to_ptr.vmem [resolvable:$true] %s107_s13 }
  0x7c   :  { %p4248_p1 = scmp.lt.u32.totalorder %s4244_s14, %s4619_s8 }
  0x7e   :  { %p4250_p2 = pnand %p4248_p1, %p4245_p0 }
  0x80   :  { %4253 = shalt.err (!%p4250_p2)
}
  0x81   :  { %s4254_s23 = scalar_lea.vmem %s108_s13, 16  ;;  %s4258_s6 = scalar_lea.vmem %s108_s13, 32 }
  0x82   :  { %p4255_p3 = scmp.ne.s32.totalorder %s108_s13, %s4254_s23  ;;  %p4259_p4 = scmp.lt.s32.totalorder %s108_s13, %s108_s13 }
  0x83   :  { %p4260_p5 = scmp.lt.s32.totalorder %s4258_s6, %s4254_s23 }
  0x85   :  { %p4261_p6 = por %p4260_p5, %p4259_p4 }
  0x87   :  { %p4262_p7 = pnand %p4261_p6, %p4255_p3 }
  0x89   :  { %4265 = shalt.err (!%p4262_p7)
}
  0x8a   :  { %110 = dma.hbm_to_vmem [thread:$0]  %s4619_s8, 16, %s108_s13, [#allocation15]  }
  0x8b   :  { %4310 = dma.done.wait [#allocation3], 288  }
  0x8c   :  { %4311 = vsyncadd [#allocation3], 4294967008 }
  0x8d   :  { %4312 = dma.done.wait [#allocation6], 34624  }
  0x8e   :  { %4313 = vsyncadd [#allocation6], 4294932672 }
  0x8f   :  { %4314 = dma.done.wait [#allocation9], 8224  }
  0x90   :  { %4315 = vsyncadd [#allocation9], 4294959072 }
  0x91   :  { %4316 = dma.done.wait [#allocation12], 2064  }
  0x92   :  { %4317 = vsyncadd [#allocation12], 4294965232 }
  0x93   :  { %4318 = dma.done.wait [#allocation15], 16  }
  0x94   :  { %4319 = vsyncadd [#allocation15], 4294967280  ;;  %v4338_v0 = vmov 0   ;;  %v3562_v1 = vld [vmem:[#allocation5 + $0x4] ss:$16 sps:$4 sm:$0xff]   ;;  %vm1847_vm0 = vcmask 1043456   ;;  %v146_v42 = vlaneseq }
  0x95   :  { %2056 = vmatprep.mubr.bf16.mxu1 %v4338_v0  ;;  %v3564_v2 = vld [vmem:[#allocation5 + $0x804] ss:$16 sps:$4 sm:$0xff]   ;;  %1860 = vmatprep.subr.bf16.mxu0 %v3562_v1  ;;  %v3566_v3 = vld [vmem:[#allocation5] ss:$16 sps:$4 sm:$0xff]   ;;  %v3589_v19 = vld [vmem:[#allocation5 + $0xc] ss:$16 sps:$4 sm:$0xff]  }
  0x96   :  { %v3567_v4 = vld [vmem:[#allocation5 + $0x800] ss:$16 sps:$4 sm:$0xff]   ;;  %2024 = vmatprep.subr.bf16.mxu1 %v3564_v2  ;;  %v3568_v5 = vld [vmem:[#allocation5 + $0x24] ss:$16 sps:$4 sm:$0xff]   ;;  %1861 = vmatpush1.bf16.msra.mxu0 %v3566_v3  ;;  %v3587_v22 = vld [vmem:[#allocation5 + $0x8] ss:$16 sps:$4 sm:$0xff]  }
  0x97   :  { %2025 = vmatpush1.bf16.msra.mxu1 %v3567_v4  ;;  %v3570_v6 = vld [vmem:[#allocation5 + $0x824] ss:$16 sps:$4 sm:$0xff]   ;;  %v3572_v7 = vld [vmem:[#allocation5 + $0x20] ss:$16 sps:$4 sm:$0xff]   ;;  %1862 = vmatprep.subr.bf16.mxu0 %v3568_v5  ;;  %vm1843_vm1 = vcmask 457728   ;;  %v4502_v47 = vshrl.u32 %v146_v42, 7 }
  0x98   :  { %v3573_v8 = vld [vmem:[#allocation5 + $0x820] ss:$16 sps:$4 sm:$0xff]   ;;  %2026 = vmatprep.subr.bf16.mxu1 %v3570_v6  ;;  %v3574_v9 = vld [vmem:[#allocation5 + $0x44] ss:$16 sps:$4 sm:$0xff]   ;;  %v3595_v26 = vld [vmem:[#allocation5 + $0x2c] ss:$16 sps:$4 sm:$0xff]  }
  0x99   :  { %v3576_v10 = vld [vmem:[#allocation5 + $0x844] ss:$16 sps:$4 sm:$0xff]   ;;  %v3578_v11 = vld [vmem:[#allocation5 + $0x40] ss:$16 sps:$4 sm:$0xff]   ;;  %v3593_v27 = vld [vmem:[#allocation5 + $0x28] ss:$16 sps:$4 sm:$0xff]  }
  0x9a   :  { %1863 = vmatpush1.bf16.msra.mxu0 %v3572_v7  ;;  %v3579_v12 = vld [vmem:[#allocation5 + $0x840] ss:$16 sps:$4 sm:$0xff]   ;;  %v3580_v13 = vld [vmem:[#allocation5 + $0x64] ss:$16 sps:$4 sm:$0xff]   ;;  %v3601_v30 = vld [vmem:[#allocation5 + $0x4c] ss:$16 sps:$4 sm:$0xff]  }
  0x9b   :  { %2027 = vmatpush1.bf16.msra.mxu1 %v3573_v8  ;;  %1864 = vmatprep.subr.bf16.mxu0 %v3574_v9  ;;  %v469_v14 = vld [vmem:[#allocation5 + $0x860] sm:$0xff]  ;;  %v3084_v21 = vld.sshfl [vmem:[#allocation2 + $0x10] sm:$0x3 pattern:$0x76325410]  ;;  %v136_v57 = vld [vmem:[#allocation2] sm:$0xff] }
  0x9c   :  { %2028 = vmatprep.subr.bf16.mxu1 %v3576_v10  ;;  %v3354_v15 = vcombine.high %v469_v14, %v469_v14  ;;  %v3353_v16 = vcombine.low %v469_v14, %v469_v14  ;;  %v3583_v17 = vld [vmem:[#allocation5 + $0x60] ss:$16 sps:$4 sm:$0xff]   ;;  %v3585_v18 = vld [vmem:[#allocation5 + $0x84] ss:$16 sps:$4 sm:$0xff]   ;;  %v4498_v23 = vpack.c.bf16 %v3084_v21, %v3084_v21  ;;  %v3599_v31 = vld [vmem:[#allocation5 + $0x48] ss:$16 sps:$4 sm:$0xff]   ;;  %v142_v10 = vcombine.high %v136_v57, %v136_v57 }
  0x9d   :  { %v3590_v24 = vld [vmem:[#allocation5 + $0x80] ss:$16 sps:$4 sm:$0xff]   ;;  %v3591_v25 = vld [vmem:[#allocation5 + $0xa4] ss:$16 sps:$4 sm:$0xff]   ;;  %v3607_v34 = vld [vmem:[#allocation5 + $0x6c] ss:$16 sps:$4 sm:$0xff]  }
  0x9e   :  { %1865 = vmatpush1.bf16.msra.mxu0 %v3578_v11  ;;  %v1849_v20 = vsel %vm1847_vm0, %v3353_v16, 0  ;;  %v3596_v28 = vld [vmem:[#allocation5 + $0xa0] ss:$16 sps:$4 sm:$0xff]   ;;  %v3597_v29 = vld [vmem:[#allocation5 + $0xc4] ss:$16 sps:$4 sm:$0xff]   ;;  %vm4341_vm2 = vmmov 0  }
  0x9f   :  { %2029 = vmatpush1.bf16.msra.mxu1 %v3579_v12  ;;  %1866 = vmatprep.subr.bf16.mxu0 %v3580_v13  ;;  %v3602_v32 = vld [vmem:[#allocation5 + $0xc0] ss:$16 sps:$4 sm:$0xff]   ;;  %v3603_v33 = vld [vmem:[#allocation5 + $0xe4] ss:$16 sps:$4 sm:$0xff]   ;;  %v3605_v35 = vld [vmem:[#allocation5 + $0x68] ss:$16 sps:$4 sm:$0xff]  }
  0xa0   :  { %3357 = vmatprep.subr.msk.bf16.mxu1 %vm1847_vm0, %v3354_v15  ;;  %v3608_v36 = vld [vmem:[#allocation5 + $0xe0] ss:$16 sps:$4 sm:$0xff]   ;;  %v3609_v37 = vld [vmem:[#allocation5 + $0x104] ss:$16 sps:$4 sm:$0xff]   ;;  %v3613_v38 = vld [vmem:[#allocation5 + $0x8c] ss:$16 sps:$4 sm:$0xff]  }
  0xa1   :  { %v3611_v39 = vld [vmem:[#allocation5 + $0x88] ss:$16 sps:$4 sm:$0xff]   ;;  %v4339_v40 = vmov 1983009808   ;;  %v3614_v43 = vld [vmem:[#allocation5 + $0x100] ss:$16 sps:$4 sm:$0xff]  }
  0xa2   :  { %1867 = vmatpush1.bf16.msra.mxu0 %v3583_v17  ;;  %v144_v41 = vunpack.c.l.s4 %v4339_v40  ;;  %v3615_v44 = vld [vmem:[#allocation5 + $0x124] ss:$16 sps:$4 sm:$0xff]   ;;  %v3619_v45 = vld [vmem:[#allocation5 + $0xac] ss:$16 sps:$4 sm:$0xff]   ;;  %v3617_v48 = vld [vmem:[#allocation5 + $0xa8] ss:$16 sps:$4 sm:$0xff]  }
  0xa3   :  { %2031 = vmatpush1.bf16.msra.mxu1 %v1849_v20  ;;  %1868 = vmatprep.subr.bf16.mxu0 %v3585_v18  ;;  %v3620_v49 = vld [vmem:[#allocation5 + $0x120] ss:$16 sps:$4 sm:$0xff]   ;;  %v3621_v50 = vld [vmem:[#allocation5 + $0x144] ss:$16 sps:$4 sm:$0xff]   ;;  %v3625_v51 = vld [vmem:[#allocation5 + $0xcc] ss:$16 sps:$4 sm:$0xff]  }
  0xa4   :  { %2065 = vmatprep.subr.bf16.mxu1 %v3589_v19  ;;  %v145_v46 = vunpack.c.0.s8 %v144_v41  ;;  %v3623_v52 = vld [vmem:[#allocation5 + $0xc8] ss:$16 sps:$4 sm:$0xff]   ;;  %v3626_v54 = vld [vmem:[#allocation5 + $0x140] ss:$16 sps:$4 sm:$0xff]   ;;  %v3627_v55 = vld [vmem:[#allocation5 + $0x164] ss:$16 sps:$4 sm:$0xff]  }
  0xa5   :  { %v3631_v56 = vld [vmem:[#allocation5 + $0xec] ss:$16 sps:$4 sm:$0xff]   ;;  %v3629_v58 = vld [vmem:[#allocation5 + $0xe8] ss:$16 sps:$4 sm:$0xff]   ;;  %v3632_v59 = vld [vmem:[#allocation5 + $0x160] ss:$16 sps:$4 sm:$0xff]  }
  0xa6   :  { %3358 = vmatmul.mubr.msk.bf16.vlgmr.msra.gmra.mrb[0].mxu1 %vm1843_vm1, %v4498_v23  ;;  %1869 = vmatpush1.bf16.msra.mxu0 %v3590_v24  ;;  %v4505_v53 = vsub.s32 %v145_v46, %v4502_v47  ;;  %v3633_v61 = vld [vmem:[#allocation5 + $0x184] ss:$16 sps:$4 sm:$0xff]   ;;  %v3637_v62 = vld [vmem:[#allocation5 + $0x10c] ss:$16 sps:$4 sm:$0xff]   ;;  %v3635_v1 = vld [vmem:[#allocation5 + $0x108] ss:$16 sps:$4 sm:$0xff]  }
  0xa7   :  { %2066 = vmatpush1.bf16.msra.mxu1 %v3587_v22  ;;  %1870 = vmatprep.subr.bf16.mxu0 %v3591_v25  ;;  %v3638_v2 = vld [vmem:[#allocation5 + $0x180] ss:$16 sps:$4 sm:$0xff]   ;;  %v3639_v4 = vld [vmem:[#allocation5 + $0x1a4] ss:$16 sps:$4 sm:$0xff]   ;;  %v3643_v5 = vld [vmem:[#allocation5 + $0x12c] ss:$16 sps:$4 sm:$0xff]  }
  0xa8   :  { %2067 = vmatprep.subr.bf16.mxu1 %v3595_v26  ;;  %v149_v60 = vrot.slane %v136_v57, %v4505_v53  ;;  %v3641_v6 = vld [vmem:[#allocation5 + $0x128] ss:$16 sps:$4 sm:$0xff]   ;;  %v3644_v7 = vld [vmem:[#allocation5 + $0x1a0] ss:$16 sps:$4 sm:$0xff]   ;;  %v3645_v8 = vld [vmem:[#allocation5 + $0x1c4] ss:$16 sps:$4 sm:$0xff]   ;;  %v4509_v15 = vrot.slane %v142_v10, %v4505_v53 }
  0xa9   :  { %v3649_v9 = vld [vmem:[#allocation5 + $0x14c] ss:$16 sps:$4 sm:$0xff]   ;;  %v3647_v11 = vld [vmem:[#allocation5 + $0x148] ss:$16 sps:$4 sm:$0xff]   ;;  %v3650_v12 = vld [vmem:[#allocation5 + $0x1c0] ss:$16 sps:$4 sm:$0xff]  }
  0xaa   :  { %1871 = vmatpush1.bf16.msra.mxu0 %v3596_v28  ;;  %v157_v63 = vcombine.high %v149_v60, %v149_v60  ;;  %v3651_v13 = vld [vmem:[#allocation5 + $0x1e4] ss:$16 sps:$4 sm:$0xff]   ;;  %v3655_v14 = vld [vmem:[#allocation5 + $0x16c] ss:$16 sps:$4 sm:$0xff]   ;;  %v3653_v16 = vld [vmem:[#allocation5 + $0x168] ss:$16 sps:$4 sm:$0xff]   ;;  %v158_v20 = vcombine.high %v4509_v15, %v4509_v15  ;;  %v192_v24 = vpack.c.bf16 %v149_v60, %v149_v60 }
  0xab   :  { %2068 = vmatpush1.bf16.msra.mxu1 %v3593_v27  ;;  %1872 = vmatprep.subr.bf16.mxu0 %v3597_v29  ;;  %v3656_v17 = vld [vmem:[#allocation5 + $0x1e0] ss:$16 sps:$4 sm:$0xff]   ;;  %v3660_v18 = vld [vmem:[#allocation5 + $0x204] ss:$16 sps:$4 sm:$0xff]   ;;  %v3663_v19 = vld [vmem:[#allocation5 + $0x18c] ss:$16 sps:$4 sm:$0xff]  }
  0xac   :  { %2069 = vmatprep.subr.bf16.mxu1 %v3601_v30  ;;  %v193_v3 = vpack.c.bf16 %v157_v63, %v157_v63  ;;  %v3658_v21 = vld [vmem:[#allocation5 + $0x200] ss:$16 sps:$4 sm:$0xff]   ;;  %v3661_v22 = vld [vmem:[#allocation5 + $0x188] ss:$16 sps:$4 sm:$0xff]   ;;  %v3666_v25 = vld [vmem:[#allocation5 + $0x224] ss:$16 sps:$4 sm:$0xff]   ;;  %v195_v27 = vpack.c.bf16 %v158_v20, %v158_v20 }
  0xad   :  { %v3669_v26 = vld [vmem:[#allocation5 + $0x1ac] ss:$16 sps:$4 sm:$0xff]   ;;  %v3664_v28 = vld [vmem:[#allocation5 + $0x220] ss:$16 sps:$4 sm:$0xff]   ;;  %v3667_v29 = vld [vmem:[#allocation5 + $0x1a8] ss:$16 sps:$4 sm:$0xff]  }
  0xae   :  { %1873 = vmatpush1.bf16.msra.mxu0 %v3602_v32  ;;  %1892 = vmatprep.mubr.bf16.mxu0 %v193_v3  ;;  %v3672_v30 = vld [vmem:[#allocation5 + $0x244] ss:$16 sps:$4 sm:$0xff]   ;;  %v3670_v32 = vld [vmem:[#allocation5 + $0x240] ss:$16 sps:$4 sm:$0xff]   ;;  %v3685_v41 = vld [vmem:[#allocation5 + $0x208] ss:$16 sps:$4 sm:$0xff]  }
  0xaf   :  { %2070 = vmatpush1.bf16.msra.mxu1 %v3599_v31  ;;  %1874 = vmatprep.subr.bf16.mxu0 %v3603_v33  ;;  %v3675_v31 = vld [vmem:[#allocation5 + $0x1cc] ss:$16 sps:$4 sm:$0xff]   ;;  %v3673_v33 = vld [vmem:[#allocation5 + $0x1c8] ss:$16 sps:$4 sm:$0xff]   ;;  %v3682_v40 = vld [vmem:[#allocation5 + $0x280] ss:$16 sps:$4 sm:$0xff]  }
  0xb0   :  { %2071 = vmatprep.subr.bf16.mxu1 %v3607_v34  ;;  %2097 = vmatprep.mubr.bf16.mxu1 %v193_v3  ;;  %v3678_v34 = vld [vmem:[#allocation5 + $0x264] ss:$16 sps:$4 sm:$0xff]   ;;  %v3711_v57 = vld [vmem:[#allocation5 + $0x28c] ss:$16 sps:$4 sm:$0xff]   ;;  %v3715_v63 = vld [vmem:[#allocation5 + $0x2a8] ss:$16 sps:$4 sm:$0xff]  }
  0xb1   :  { %v3690_v42 = vld [vmem:[#allocation5 + $0x2a4] ss:$16 sps:$4 sm:$0xff]   ;;  %v3718_v3 = vld [vmem:[#allocation5 + $0x340] ss:$16 sps:$4 sm:$0xff]   ;;  %v3735_v10 = vld [vmem:[#allocation5 + $0x30c] ss:$16 sps:$4 sm:$0xff]  }
  0xb2   :  { %1875 = vmatpush1.bf16.msra.mxu0 %v3608_v36  ;;  %v3676_v36 = vld [vmem:[#allocation5 + $0x260] ss:$16 sps:$4 sm:$0xff]   ;;  %v3696_v46 = vld [vmem:[#allocation5 + $0x2c4] ss:$16 sps:$4 sm:$0xff]   ;;  %s4342_s13 = smov [#allocation16]  }
  0xb3   :  { %2072 = vmatpush1.bf16.msra.mxu1 %v3605_v35  ;;  %1876 = vmatprep.subr.bf16.mxu0 %v3609_v37  ;;  %v3681_v35 = vld [vmem:[#allocation5 + $0x1ec] ss:$16 sps:$4 sm:$0xff]   ;;  %v3679_v37 = vld [vmem:[#allocation5 + $0x1e8] ss:$16 sps:$4 sm:$0xff]   ;;  %v3714_v60 = vld [vmem:[#allocation5 + $0x324] ss:$16 sps:$4 sm:$0xff]  }
  0xb4   :  { %2073 = vmatprep.subr.bf16.mxu1 %v3613_v38  ;;  %v3684_v38 = vld [vmem:[#allocation5 + $0x284] ss:$16 sps:$4 sm:$0xff]   ;;  %v3742_v20 = vld [vmem:[#allocation5 + $0x3c0] ss:$16 sps:$4 sm:$0xff]   ;;  %s3057_s15 = sshll.u32 %s4342_s13, 4  ;;  %s3058_s15 = int_to_ptr.vmem [resolvable:$true] %s3057_s15 }
  0xb5   :  { %s4266_s16 = scalar_lea.vmem %s3058_s15, 32  ;;  %p4271_p9 = scmp.lt.s32.totalorder %s3058_s15, %s3058_s15 }
  0xb6   :  { %1877 = vmatpush1.bf16.msra.mxu0 %v3614_v43  ;;  %v3693_v43 = vld [vmem:[#allocation5 + $0x22c] ss:$16 sps:$4 sm:$0xff]   ;;  %p4267_p8 = scmp.ne.s32.totalorder %s3058_s15, %s4266_s16  ;;  %p4272_p10 = scmp.lt.s32.totalorder %s4266_s16, %s4266_s16 }
  0xb7   :  { %2074 = vmatpush1.bf16.msra.mxu1 %v3611_v39  ;;  %1878 = vmatprep.subr.bf16.mxu0 %v3615_v44  ;;  %v3687_v39 = vld [vmem:[#allocation5 + $0x20c] ss:$16 sps:$4 sm:$0xff]   ;;  %v3688_v44 = vld [vmem:[#allocation5 + $0x2a0] ss:$16 sps:$4 sm:$0xff]  }
  0xb8   :  { %2075 = vmatprep.subr.bf16.mxu1 %v3619_v45  ;;  %v3691_v45 = vld [vmem:[#allocation5 + $0x228] ss:$16 sps:$4 sm:$0xff]   ;;  %p4273_p11 = por %p4272_p10, %p4271_p9 }
  0xba   :  { %1879 = vmatpush1.bf16.msra.mxu0 %v3620_v49  ;;  %v3694_v49 = vld [vmem:[#allocation5 + $0x2c0] ss:$16 sps:$4 sm:$0xff]   ;;  %p4274_p12 = pnand %p4273_p11, %p4267_p8 }
  0xbb   :  { %2076 = vmatpush1.bf16.msra.mxu1 %v3617_v48  ;;  %1880 = vmatprep.subr.bf16.mxu0 %v3621_v50  ;;  %v3699_v48 = vld [vmem:[#allocation5 + $0x24c] ss:$16 sps:$4 sm:$0xff]   ;;  %v3697_v50 = vld [vmem:[#allocation5 + $0x248] ss:$16 sps:$4 sm:$0xff]  }
  0xbc   :  { %2077 = vmatprep.subr.bf16.mxu1 %v3625_v51  ;;  %v3702_v51 = vld [vmem:[#allocation5 + $0x2e4] ss:$16 sps:$4 sm:$0xff]  }
  0xbe   :  { %1881 = vmatpush1.bf16.msra.mxu0 %v3626_v54  ;;  %v3700_v54 = vld [vmem:[#allocation5 + $0x2e0] ss:$16 sps:$4 sm:$0xff]  }
  0xbf   :  { %2078 = vmatpush1.bf16.msra.mxu1 %v3623_v52  ;;  %1882 = vmatprep.subr.bf16.mxu0 %v3627_v55  ;;  %v3705_v52 = vld [vmem:[#allocation5 + $0x26c] ss:$16 sps:$4 sm:$0xff]   ;;  %v3703_v55 = vld [vmem:[#allocation5 + $0x268] ss:$16 sps:$4 sm:$0xff]  }
  0xc0   :  { %2079 = vmatprep.subr.bf16.mxu1 %v3631_v56  ;;  %v3708_v56 = vld [vmem:[#allocation5 + $0x304] ss:$16 sps:$4 sm:$0xff]  }
  0xc2   :  { %1883 = vmatpush1.bf16.msra.mxu0 %v3632_v59  ;;  %v3709_v59 = vld [vmem:[#allocation5 + $0x288] ss:$16 sps:$4 sm:$0xff]  }
  0xc3   :  { %2080 = vmatpush1.bf16.msra.mxu1 %v3629_v58  ;;  %1884 = vmatprep.subr.bf16.mxu0 %v3633_v61  ;;  %v3706_v58 = vld [vmem:[#allocation5 + $0x300] ss:$16 sps:$4 sm:$0xff]   ;;  %v3717_v61 = vld [vmem:[#allocation5 + $0x2ac] ss:$16 sps:$4 sm:$0xff]  }
  0xc4   :  { %2081 = vmatprep.subr.bf16.mxu1 %v3637_v62  ;;  %v3712_v62 = vld [vmem:[#allocation5 + $0x320] ss:$16 sps:$4 sm:$0xff]  }
  0xc6   :  { %1885 = vmatpush1.bf16.msra.mxu0 %v3638_v2  ;;  %v3723_v2 = vld [vmem:[#allocation5 + $0x2cc] ss:$16 sps:$4 sm:$0xff]  }
  0xc7   :  { %2082 = vmatpush1.bf16.msra.mxu1 %v3635_v1  ;;  %1886 = vmatprep.subr.bf16.mxu0 %v3639_v4  ;;  %v3720_v1 = vld [vmem:[#allocation5 + $0x344] ss:$16 sps:$4 sm:$0xff]   ;;  %v3721_v4 = vld [vmem:[#allocation5 + $0x2c8] ss:$16 sps:$4 sm:$0xff]  }
  0xc8   :  { %2083 = vmatprep.subr.bf16.mxu1 %v3643_v5  ;;  %v3726_v5 = vld [vmem:[#allocation5 + $0x364] ss:$16 sps:$4 sm:$0xff]  }
  0xca   :  { %1887 = vmatpush1.bf16.msra.mxu0 %v3644_v7  ;;  %v3724_v7 = vld [vmem:[#allocation5 + $0x360] ss:$16 sps:$4 sm:$0xff]  }
  0xcb   :  { %2084 = vmatpush1.bf16.msra.mxu1 %v3641_v6  ;;  %1888 = vmatprep.subr.bf16.mxu0 %v3645_v8  ;;  %v3729_v6 = vld [vmem:[#allocation5 + $0x2ec] ss:$16 sps:$4 sm:$0xff]   ;;  %v3727_v8 = vld [vmem:[#allocation5 + $0x2e8] ss:$16 sps:$4 sm:$0xff]  }
  0xcc   :  { %2085 = vmatprep.subr.bf16.mxu1 %v3649_v9  ;;  %v3732_v9 = vld [vmem:[#allocation5 + $0x384] ss:$16 sps:$4 sm:$0xff]  }
  0xce   :  { %1889 = vmatpush1.bf16.msra.mxu0 %v3650_v12  ;;  %v3733_v12 = vld [vmem:[#allocation5 + $0x308] ss:$16 sps:$4 sm:$0xff]  }
  0xcf   :  { %2086 = vmatpush1.bf16.msra.mxu1 %v3647_v11  ;;  %1890 = vmatprep.subr.bf16.mxu0 %v3651_v13  ;;  %v3730_v11 = vld [vmem:[#allocation5 + $0x380] ss:$16 sps:$4 sm:$0xff]   ;;  %v3738_v13 = vld [vmem:[#allocation5 + $0x3a4] ss:$16 sps:$4 sm:$0xff]  }
  0xd0   :  { %2087 = vmatprep.subr.bf16.mxu1 %v3655_v14  ;;  %v3741_v14 = vld [vmem:[#allocation5 + $0x32c] ss:$16 sps:$4 sm:$0xff]  }
  0xd2   :  { %1891 = vmatpush1.bf16.msra.mxu0 %v3656_v17  ;;  %v3739_v17 = vld [vmem:[#allocation5 + $0x328] ss:$16 sps:$4 sm:$0xff]  }
  0xd3   :  { %2088 = vmatpush1.bf16.msra.mxu1 %v3653_v16  ;;  %1901 = vmatprep.subr.bf16.mxu0 %v3660_v18  ;;  %v3736_v16 = vld [vmem:[#allocation5 + $0x3a0] ss:$16 sps:$4 sm:$0xff]   ;;  %v3744_v18 = vld [vmem:[#allocation5 + $0x3c4] ss:$16 sps:$4 sm:$0xff]  }
  0xd4   :  { %2089 = vmatprep.subr.bf16.mxu1 %v3663_v19  ;;  %v3747_v19 = vld [vmem:[#allocation5 + $0x34c] ss:$16 sps:$4 sm:$0xff]  }
  0xd5   :  { %1893 = vmatmul.mubr.bf16.vlgmr.msra.gmra.mrb[0].mxu0 %v192_v24 }
  0xd6   :  { %1902 = vmatpush1.bf16.msra.mxu0 %v3658_v21  ;;  %1933 = vmatprep.mubr.bf16.mxu0 %v195_v27  ;;  %v3745_v21 = vld [vmem:[#allocation5 + $0x348] ss:$16 sps:$4 sm:$0xff]  }
  0xd7   :  { %2090 = vmatpush1.bf16.msra.mxu1 %v3661_v22  ;;  %1903 = vmatprep.subr.bf16.mxu0 %v3666_v25  ;;  %v3750_v22 = vld [vmem:[#allocation5 + $0x3e4] ss:$16 sps:$4 sm:$0xff]   ;;  %v3748_v25 = vld [vmem:[#allocation5 + $0x3e0] ss:$16 sps:$4 sm:$0xff]  }
  0xd8   :  { %2091 = vmatprep.subr.bf16.mxu1 %v3669_v26  ;;  %v3751_v26 = vld [vmem:[#allocation5 + $0x368] ss:$16 sps:$4 sm:$0xff]  }
  0xda   :  { %1904 = vmatpush1.bf16.msra.mxu0 %v3664_v28  ;;  %v3759_v28 = vld [vmem:[#allocation5 + $0x38c] ss:$16 sps:$4 sm:$0xff]  }
  0xdb   :  { %2092 = vmatpush1.bf16.msra.mxu1 %v3667_v29  ;;  %1905 = vmatprep.subr.bf16.mxu0 %v3672_v30  ;;  %v3754_v29 = vld [vmem:[#allocation5 + $0x400] ss:$16 sps:$4 sm:$0xff]   ;;  %v3757_v30 = vld [vmem:[#allocation5 + $0x388] ss:$16 sps:$4 sm:$0xff]  }
  0xdc   :  { %2093 = vmatprep.subr.bf16.mxu1 %v3675_v31  ;;  %v194_v31 = vpack.c.bf16 %v4509_v15, %v4509_v15  ;;  %v3763_v15 = vld [vmem:[#allocation5 + $0x3a8] ss:$16 sps:$4 sm:$0xff]  }
  0xde   :  { %1906 = vmatpush1.bf16.msra.mxu0 %v3670_v32  ;;  %v4515_v32 = vld [vmem:[#allocation2 + $0x8] sm:$0xff] }
  0xdf   :  { %2094 = vmatpush1.bf16.msra.mxu1 %v3673_v33  ;;  %1907 = vmatprep.subr.bf16.mxu0 %v3678_v34  ;;  %v3762_v33 = vld [vmem:[#allocation5 + $0x424] ss:$16 sps:$4 sm:$0xff]   ;;  %v3765_v34 = vld [vmem:[#allocation5 + $0x3ac] ss:$16 sps:$4 sm:$0xff]  }
  0xe0   :  { %2095 = vmatprep.subr.bf16.mxu1 %v3681_v35  ;;  %v4519_v35 = vrot.slane %v4515_v32, %v4505_v53 }
  0xe2   :  { %1908 = vmatpush1.bf16.msra.mxu0 %v3676_v36  ;;  %v3760_v36 = vld [vmem:[#allocation5 + $0x420] ss:$16 sps:$4 sm:$0xff]  }
  0xe3   :  { %2096 = vmatpush1.bf16.msra.mxu1 %v3679_v37  ;;  %1909 = vmatprep.subr.bf16.mxu0 %v3684_v38  ;;  %v174_v37 = vcombine.high %v4519_v35, %v4519_v35  ;;  %v3768_v38 = vld [vmem:[#allocation5 + $0x444] ss:$16 sps:$4 sm:$0xff]  }
  0xe4   :  { %2106 = vmatprep.subr.bf16.mxu1 %v3687_v39  ;;  %v3771_v39 = vld [vmem:[#allocation5 + $0x3cc] ss:$16 sps:$4 sm:$0xff]  }
  0xe6   :  { %2098 = vmatmul.mubr.bf16.vlgmr.msra.gmra.mrb[4].mxu1 %v192_v24  ;;  %1910 = vmatpush1.bf16.msra.mxu0 %v3682_v40  ;;  %v3753_v24 = vld [vmem:[#allocation5 + $0x36c] ss:$16 sps:$4 sm:$0xff]   ;;  %v197_v40 = vpack.c.bf16 %v174_v37, %v174_v37 }
  0xe7   :  { %2107 = vmatpush1.bf16.msra.mxu1 %v3685_v41  ;;  %1911 = vmatprep.subr.bf16.mxu0 %v3690_v42  ;;  %v3766_v41 = vld [vmem:[#allocation5 + $0x440] ss:$16 sps:$4 sm:$0xff]   ;;  %v3769_v42 = vld [vmem:[#allocation5 + $0x3c8] ss:$16 sps:$4 sm:$0xff]  }
  0xe8   :  { %2108 = vmatprep.subr.bf16.mxu1 %v3693_v43  ;;  %2138 = vmatprep.mubr.bf16.mxu1 %v195_v27  ;;  %v3756_v27 = vld [vmem:[#allocation5 + $0x404] ss:$16 sps:$4 sm:$0xff]  }
  0xe9   :  { %v3774_v43 = vld [vmem:[#allocation5 + $0x464] ss:$16 sps:$4 sm:$0xff]  }
  0xea   :  { %1912 = vmatpush1.bf16.msra.mxu0 %v3688_v44  ;;  %v3777_v44 = vld [vmem:[#allocation5 + $0x3ec] ss:$16 sps:$4 sm:$0xff]  }
  0xeb   :  { %2109 = vmatpush1.bf16.msra.mxu1 %v3691_v45  ;;  %1913 = vmatprep.subr.bf16.mxu0 %v3696_v46  ;;  %v3772_v45 = vld [vmem:[#allocation5 + $0x460] ss:$16 sps:$4 sm:$0xff]   ;;  %v3775_v46 = vld [vmem:[#allocation5 + $0x3e8] ss:$16 sps:$4 sm:$0xff]  }
  0xec   :  { %2110 = vmatprep.subr.bf16.mxu1 %v3699_v48  ;;  %v3780_v48 = vld [vmem:[#allocation5 + $0x484] ss:$16 sps:$4 sm:$0xff]  }
  0xee   :  { %1914 = vmatpush1.bf16.msra.mxu0 %v3694_v49  ;;  %v3783_v49 = vld [vmem:[#allocation5 + $0x40c] ss:$16 sps:$4 sm:$0xff]  }
  0xef   :  { %2111 = vmatpush1.bf16.msra.mxu1 %v3697_v50  ;;  %1915 = vmatprep.subr.bf16.mxu0 %v3702_v51  ;;  %v3778_v50 = vld [vmem:[#allocation5 + $0x480] ss:$16 sps:$4 sm:$0xff]   ;;  %v3781_v51 = vld [vmem:[#allocation5 + $0x408] ss:$16 sps:$4 sm:$0xff]  }
  0xf0   :  { %2112 = vmatprep.subr.bf16.mxu1 %v3705_v52  ;;  %v3786_v52 = vld [vmem:[#allocation5 + $0x4a4] ss:$16 sps:$4 sm:$0xff]  }
  0xf2   :  { %1916 = vmatpush1.bf16.msra.mxu0 %v3700_v54  ;;  %v3789_v54 = vld [vmem:[#allocation5 + $0x42c] ss:$16 sps:$4 sm:$0xff]  }
  0xf3   :  { %2113 = vmatpush1.bf16.msra.mxu1 %v3703_v55  ;;  %1917 = vmatprep.subr.bf16.mxu0 %v3708_v56  ;;  %v3784_v55 = vld [vmem:[#allocation5 + $0x4a0] ss:$16 sps:$4 sm:$0xff]   ;;  %v3787_v56 = vld [vmem:[#allocation5 + $0x428] ss:$16 sps:$4 sm:$0xff]  }
  0xf4   :  { %2114 = vmatprep.subr.bf16.mxu1 %v3711_v57  ;;  %v3792_v57 = vld [vmem:[#allocation5 + $0x4c4] ss:$16 sps:$4 sm:$0xff]  }
  0xf6   :  { %1918 = vmatpush1.bf16.msra.mxu0 %v3706_v58  ;;  %v3795_v58 = vld [vmem:[#allocation5 + $0x44c] ss:$16 sps:$4 sm:$0xff]  }
  0xf7   :  { %2115 = vmatpush1.bf16.msra.mxu1 %v3709_v59  ;;  %1919 = vmatprep.subr.bf16.mxu0 %v3714_v60  ;;  %v3790_v59 = vld [vmem:[#allocation5 + $0x4c0] ss:$16 sps:$4 sm:$0xff]   ;;  %v3793_v60 = vld [vmem:[#allocation5 + $0x448] ss:$16 sps:$4 sm:$0xff]  }
  0xf8   :  { %2116 = vmatprep.subr.bf16.mxu1 %v3717_v61  ;;  %v3798_v61 = vld [vmem:[#allocation5 + $0x4e4] ss:$16 sps:$4 sm:$0xff]  }
  0xfa   :  { %1920 = vmatpush1.bf16.msra.mxu0 %v3712_v62  ;;  %v3801_v62 = vld [vmem:[#allocation5 + $0x46c] ss:$16 sps:$4 sm:$0xff]  }
  0xfb   :  { %2117 = vmatpush1.bf16.msra.mxu1 %v3715_v63  ;;  %1921 = vmatprep.subr.bf16.mxu0 %v3720_v1  ;;  %v3796_v63 = vld [vmem:[#allocation5 + $0x4e0] ss:$16 sps:$4 sm:$0xff]   ;;  %v3799_v1 = vld [vmem:[#allocation5 + $0x468] ss:$16 sps:$4 sm:$0xff]  }
  0xfc   :  { %2118 = vmatprep.subr.bf16.mxu1 %v3723_v2  ;;  %v3804_v2 = vld [vmem:[#allocation5 + $0x504] ss:$16 sps:$4 sm:$0xff]  }
  0xfe   :  { %1922 = vmatpush1.bf16.msra.mxu0 %v3718_v3  ;;  %v3807_v3 = vld [vmem:[#allocation5 + $0x48c] ss:$16 sps:$4 sm:$0xff]  }
  0xff   :  { %2119 = vmatpush1.bf16.msra.mxu1 %v3721_v4  ;;  %1923 = vmatprep.subr.bf16.mxu0 %v3726_v5  ;;  %v3802_v4 = vld [vmem:[#allocation5 + $0x500] ss:$16 sps:$4 sm:$0xff]   ;;  %v3805_v5 = vld [vmem:[#allocation5 + $0x488] ss:$16 sps:$4 sm:$0xff]  }
 0x100   :  { %2120 = vmatprep.subr.bf16.mxu1 %v3729_v6  ;;  %v3810_v6 = vld [vmem:[#allocation5 + $0x524] ss:$16 sps:$4 sm:$0xff]  }
 0x102   :  { %1924 = vmatpush1.bf16.msra.mxu0 %v3724_v7  ;;  %v3813_v7 = vld [vmem:[#allocation5 + $0x4ac] ss:$16 sps:$4 sm:$0xff]  }
 0x103   :  { %2121 = vmatpush1.bf16.msra.mxu1 %v3727_v8  ;;  %1925 = vmatprep.subr.bf16.mxu0 %v3732_v9  ;;  %v3808_v8 = vld [vmem:[#allocation5 + $0x520] ss:$16 sps:$4 sm:$0xff]   ;;  %v3811_v9 = vld [vmem:[#allocation5 + $0x4a8] ss:$16 sps:$4 sm:$0xff]  }
 0x104   :  { %2122 = vmatprep.subr.bf16.mxu1 %v3735_v10  ;;  %v3816_v10 = vld [vmem:[#allocation5 + $0x544] ss:$16 sps:$4 sm:$0xff]  }
 0x106   :  { %1926 = vmatpush1.bf16.msra.mxu0 %v3730_v11  ;;  %v3819_v11 = vld [vmem:[#allocation5 + $0x4cc] ss:$16 sps:$4 sm:$0xff]  }
 0x107   :  { %2123 = vmatpush1.bf16.msra.mxu1 %v3733_v12  ;;  %1927 = vmatprep.subr.bf16.mxu0 %v3738_v13  ;;  %v3814_v12 = vld [vmem:[#allocation5 + $0x540] ss:$16 sps:$4 sm:$0xff]   ;;  %v3817_v13 = vld [vmem:[#allocation5 + $0x4c8] ss:$16 sps:$4 sm:$0xff]  }
 0x108   :  { %2124 = vmatprep.subr.bf16.mxu1 %v3741_v14  ;;  %v3822_v14 = vld [vmem:[#allocation5 + $0x564] ss:$16 sps:$4 sm:$0xff]  }
 0x10a   :  { %1928 = vmatpush1.bf16.msra.mxu0 %v3736_v16  ;;  %v3825_v16 = vld [vmem:[#allocation5 + $0x4ec] ss:$16 sps:$4 sm:$0xff]  }
 0x10b   :  { %2125 = vmatpush1.bf16.msra.mxu1 %v3739_v17  ;;  %1929 = vmatprep.subr.bf16.mxu0 %v3744_v18  ;;  %v3820_v17 = vld [vmem:[#allocation5 + $0x560] ss:$16 sps:$4 sm:$0xff]   ;;  %v3823_v18 = vld [vmem:[#allocation5 + $0x4e8] ss:$16 sps:$4 sm:$0xff]  }
 0x10c   :  { %2126 = vmatprep.subr.bf16.mxu1 %v3747_v19  ;;  %v3828_v19 = vld [vmem:[#allocation5 + $0x584] ss:$16 sps:$4 sm:$0xff]  }
 0x10e   :  { %1930 = vmatpush1.bf16.msra.mxu0 %v3742_v20  ;;  %v3831_v20 = vld [vmem:[#allocation5 + $0x50c] ss:$16 sps:$4 sm:$0xff]  }
 0x10f   :  { %2127 = vmatpush1.bf16.msra.mxu1 %v3745_v21  ;;  %1931 = vmatprep.subr.bf16.mxu0 %v3750_v22  ;;  %v3826_v21 = vld [vmem:[#allocation5 + $0x580] ss:$16 sps:$4 sm:$0xff]   ;;  %v3829_v22 = vld [vmem:[#allocation5 + $0x508] ss:$16 sps:$4 sm:$0xff]  }
 0x110   :  { %2128 = vmatprep.subr.bf16.mxu1 %v3753_v24  ;;  %v3834_v24 = vld [vmem:[#allocation5 + $0x5a4] ss:$16 sps:$4 sm:$0xff]  }
 0x112   :  { %1932 = vmatpush1.bf16.msra.mxu0 %v3748_v25  ;;  %v3837_v25 = vld [vmem:[#allocation5 + $0x52c] ss:$16 sps:$4 sm:$0xff]  }
 0x113   :  { %2129 = vmatpush1.bf16.msra.mxu1 %v3751_v26  ;;  %1942 = vmatprep.subr.bf16.mxu0 %v3756_v27  ;;  %v3832_v26 = vld [vmem:[#allocation5 + $0x5a0] ss:$16 sps:$4 sm:$0xff]   ;;  %v3835_v27 = vld [vmem:[#allocation5 + $0x528] ss:$16 sps:$4 sm:$0xff]  }
 0x114   :  { %2130 = vmatprep.subr.bf16.mxu1 %v3759_v28  ;;  %v3840_v28 = vld [vmem:[#allocation5 + $0x5c4] ss:$16 sps:$4 sm:$0xff]  }
 0x115   :  { %1934 = vmatmul.mubr.bf16.vlgmr.msra.gmra.mrb[0].mxu0 %v194_v31 }
 0x116   :  { %1943 = vmatpush1.bf16.msra.mxu0 %v3754_v29  ;;  %1974 = vmatprep.mubr.bf16.mxu0 %v197_v40  ;;  %v3843_v29 = vld [vmem:[#allocation5 + $0x54c] ss:$16 sps:$4 sm:$0xff]  }
 0x117   :  { %2131 = vmatpush1.bf16.msra.mxu1 %v3757_v30  ;;  %1944 = vmatprep.subr.bf16.mxu0 %v3762_v33  ;;  %v159_v30 = vcombine.high %v4515_v32, %v4515_v32  ;;  %v3841_v33 = vld [vmem:[#allocation5 + $0x548] ss:$16 sps:$4 sm:$0xff]  }
 0x118   :  { %2132 = vmatprep.subr.bf16.mxu1 %v3765_v34  ;;  %v3846_v34 = vld [vmem:[#allocation5 + $0x5e4] ss:$16 sps:$4 sm:$0xff]  }
 0x119   :  { %v4526_v37 = vrot.slane %v159_v30, %v4505_v53  ;;  %v3858_v53 = vld [vmem:[#allocation5 + $0x624] ss:$16 sps:$4 sm:$0xff]   ;;  %v3916_v30 = vld [vmem:[#allocation5 + $0x760] ss:$16 sps:$4 sm:$0xff]  }
 0x11a   :  { %1945 = vmatpush1.bf16.msra.mxu0 %v3760_v36  ;;  %v3849_v36 = vld [vmem:[#allocation5 + $0x56c] ss:$16 sps:$4 sm:$0xff]  }
 0x11b   :  { %2133 = vmatpush1.bf16.msra.mxu1 %v3763_v15  ;;  %1946 = vmatprep.subr.bf16.mxu0 %v3768_v38  ;;  %v3844_v15 = vld [vmem:[#allocation5 + $0x5e0] ss:$16 sps:$4 sm:$0xff]   ;;  %v3847_v38 = vld [vmem:[#allocation5 + $0x568] ss:$16 sps:$4 sm:$0xff]   ;;  %v175_v32 = vcombine.high %v4526_v37, %v4526_v37 }
 0x11c   :  { %2134 = vmatprep.subr.bf16.mxu1 %v3771_v39  ;;  %v3852_v39 = vld [vmem:[#allocation5 + $0x604] ss:$16 sps:$4 sm:$0xff]  }
 0x11e   :  { %1947 = vmatpush1.bf16.msra.mxu0 %v3766_v41  ;;  %v196_v41 = vpack.c.bf16 %v4519_v35, %v4519_v35  ;;  %v3865_v35 = vld [vmem:[#allocation5 + $0x5c8] ss:$16 sps:$4 sm:$0xff]  }
 0x11f   :  { %2135 = vmatpush1.bf16.msra.mxu1 %v3769_v42  ;;  %1948 = vmatprep.subr.bf16.mxu0 %v3774_v43  ;;  %v3850_v42 = vld [vmem:[#allocation5 + $0x600] ss:$16 sps:$4 sm:$0xff]   ;;  %v3853_v43 = vld [vmem:[#allocation5 + $0x588] ss:$16 sps:$4 sm:$0xff]  }
 0x120   :  { %2136 = vmatprep.subr.bf16.mxu1 %v3777_v44  ;;  %v3861_v44 = vld [vmem:[#allocation5 + $0x5ac] ss:$16 sps:$4 sm:$0xff]  }
 0x122   :  { %1949 = vmatpush1.bf16.msra.mxu0 %v3772_v45  ;;  %v199_v45 = vpack.c.bf16 %v175_v32, %v175_v32  ;;  %v3931_v32 = vld [vmem:[#allocation5 + $0x728] ss:$16 sps:$4 sm:$0xff]  }
 0x123   :  { %2137 = vmatpush1.bf16.msra.mxu1 %v3775_v46  ;;  %1950 = vmatprep.subr.bf16.mxu0 %v3780_v48  ;;  %v3856_v46 = vld [vmem:[#allocation5 + $0x620] ss:$16 sps:$4 sm:$0xff]   ;;  %v3859_v48 = vld [vmem:[#allocation5 + $0x5a8] ss:$16 sps:$4 sm:$0xff]  }
 0x124   :  { %2147 = vmatprep.subr.bf16.mxu1 %v3783_v49  ;;  %v3864_v49 = vld [vmem:[#allocation5 + $0x644] ss:$16 sps:$4 sm:$0xff]  }
 0x126   :  { %2139 = vmatmul.mubr.bf16.vlgmr.msra.gmra.mrb[4].mxu1 %v194_v31  ;;  %1951 = vmatpush1.bf16.msra.mxu0 %v3778_v50  ;;  %v3838_v31 = vld [vmem:[#allocation5 + $0x5c0] ss:$16 sps:$4 sm:$0xff]   ;;  %v3867_v50 = vld [vmem:[#allocation5 + $0x5cc] ss:$16 sps:$4 sm:$0xff]  }
 0x127   :  { %2148 = vmatpush1.bf16.msra.mxu1 %v3781_v51  ;;  %1952 = vmatprep.subr.bf16.mxu0 %v3786_v52  ;;  %v3862_v51 = vld [vmem:[#allocation5 + $0x640] ss:$16 sps:$4 sm:$0xff]   ;;  %v3870_v52 = vld [vmem:[#allocation5 + $0x664] ss:$16 sps:$4 sm:$0xff]  }
 0x128   :  { %2149 = vmatprep.subr.bf16.mxu1 %v3789_v54  ;;  %2179 = vmatprep.mubr.bf16.mxu1 %v197_v40  ;;  %v3855_v40 = vld [vmem:[#allocation5 + $0x58c] ss:$16 sps:$4 sm:$0xff]  }
 0x129   :  { %v3873_v54 = vld [vmem:[#allocation5 + $0x5ec] ss:$16 sps:$4 sm:$0xff]  }
 0x12a   :  { %1953 = vmatpush1.bf16.msra.mxu0 %v3784_v55  ;;  %v3868_v55 = vld [vmem:[#allocation5 + $0x660] ss:$16 sps:$4 sm:$0xff]  }
 0x12b   :  { %2150 = vmatpush1.bf16.msra.mxu1 %v3787_v56  ;;  %1954 = vmatprep.subr.bf16.mxu0 %v3792_v57  ;;  %v3871_v56 = vld [vmem:[#allocation5 + $0x5e8] ss:$16 sps:$4 sm:$0xff]   ;;  %v3876_v57 = vld [vmem:[#allocation5 + $0x684] ss:$16 sps:$4 sm:$0xff]  }
 0x12c   :  { %2151 = vmatprep.subr.bf16.mxu1 %v3795_v58  ;;  %v3879_v58 = vld [vmem:[#allocation5 + $0x60c] ss:$16 sps:$4 sm:$0xff]  }
 0x12e   :  { %1955 = vmatpush1.bf16.msra.mxu0 %v3790_v59  ;;  %v3874_v59 = vld [vmem:[#allocation5 + $0x680] ss:$16 sps:$4 sm:$0xff]  }
 0x12f   :  { %2152 = vmatpush1.bf16.msra.mxu1 %v3793_v60  ;;  %1956 = vmatprep.subr.bf16.mxu0 %v3798_v61  ;;  %v3877_v60 = vld [vmem:[#allocation5 + $0x608] ss:$16 sps:$4 sm:$0xff]   ;;  %v3882_v61 = vld [vmem:[#allocation5 + $0x6a4] ss:$16 sps:$4 sm:$0xff]  }
 0x130   :  { %2153 = vmatprep.subr.bf16.mxu1 %v3801_v62  ;;  %v3885_v62 = vld [vmem:[#allocation5 + $0x62c] ss:$16 sps:$4 sm:$0xff]  }
 0x132   :  { %1957 = vmatpush1.bf16.msra.mxu0 %v3796_v63  ;;  %v3880_v63 = vld [vmem:[#allocation5 + $0x6a0] ss:$16 sps:$4 sm:$0xff]  }
 0x133   :  { %2154 = vmatpush1.bf16.msra.mxu1 %v3799_v1  ;;  %1958 = vmatprep.subr.bf16.mxu0 %v3804_v2  ;;  %v3883_v1 = vld [vmem:[#allocation5 + $0x628] ss:$16 sps:$4 sm:$0xff]   ;;  %v3888_v2 = vld [vmem:[#allocation5 + $0x6c4] ss:$16 sps:$4 sm:$0xff]  }
 0x134   :  { %2155 = vmatprep.subr.bf16.mxu1 %v3807_v3  ;;  %v3891_v3 = vld [vmem:[#allocation5 + $0x64c] ss:$16 sps:$4 sm:$0xff]  }
 0x136   :  { %1959 = vmatpush1.bf16.msra.mxu0 %v3802_v4  ;;  %v3886_v4 = vld [vmem:[#allocation5 + $0x6c0] ss:$16 sps:$4 sm:$0xff]  }
 0x137   :  { %2156 = vmatpush1.bf16.msra.mxu1 %v3805_v5  ;;  %1960 = vmatprep.subr.bf16.mxu0 %v3810_v6  ;;  %v3889_v5 = vld [vmem:[#allocation5 + $0x648] ss:$16 sps:$4 sm:$0xff]   ;;  %v3894_v6 = vld [vmem:[#allocation5 + $0x6e4] ss:$16 sps:$4 sm:$0xff]  }
 0x138   :  { %2157 = vmatprep.subr.bf16.mxu1 %v3813_v7  ;;  %v3897_v7 = vld [vmem:[#allocation5 + $0x66c] ss:$16 sps:$4 sm:$0xff]  }
 0x13a   :  { %1961 = vmatpush1.bf16.msra.mxu0 %v3808_v8  ;;  %v3892_v8 = vld [vmem:[#allocation5 + $0x6e0] ss:$16 sps:$4 sm:$0xff]  }
 0x13b   :  { %2158 = vmatpush1.bf16.msra.mxu1 %v3811_v9  ;;  %1962 = vmatprep.subr.bf16.mxu0 %v3816_v10  ;;  %v3895_v9 = vld [vmem:[#allocation5 + $0x668] ss:$16 sps:$4 sm:$0xff]   ;;  %v3900_v10 = vld [vmem:[#allocation5 + $0x704] ss:$16 sps:$4 sm:$0xff]  }
 0x13c   :  { %2159 = vmatprep.subr.bf16.mxu1 %v3819_v11  ;;  %v3903_v11 = vld [vmem:[#allocation5 + $0x68c] ss:$16 sps:$4 sm:$0xff]  }
 0x13e   :  { %1963 = vmatpush1.bf16.msra.mxu0 %v3814_v12  ;;  %v3898_v12 = vld [vmem:[#allocation5 + $0x700] ss:$16 sps:$4 sm:$0xff]  }
 0x13f   :  { %2160 = vmatpush1.bf16.msra.mxu1 %v3817_v13  ;;  %1964 = vmatprep.subr.bf16.mxu0 %v3822_v14  ;;  %v3901_v13 = vld [vmem:[#allocation5 + $0x688] ss:$16 sps:$4 sm:$0xff]   ;;  %v3906_v14 = vld [vmem:[#allocation5 + $0x724] ss:$16 sps:$4 sm:$0xff]  }
 0x140   :  { %2161 = vmatprep.subr.bf16.mxu1 %v3825_v16  ;;  %v3909_v16 = vld [vmem:[#allocation5 + $0x6ac] ss:$16 sps:$4 sm:$0xff]  }
 0x142   :  { %1965 = vmatpush1.bf16.msra.mxu0 %v3820_v17  ;;  %v3904_v17 = vld [vmem:[#allocation5 + $0x720] ss:$16 sps:$4 sm:$0xff]  }
 0x143   :  { %2162 = vmatpush1.bf16.msra.mxu1 %v3823_v18  ;;  %1966 = vmatprep.subr.bf16.mxu0 %v3828_v19  ;;  %v3907_v18 = vld [vmem:[#allocation5 + $0x6a8] ss:$16 sps:$4 sm:$0xff]   ;;  %v3912_v19 = vld [vmem:[#allocation5 + $0x744] ss:$16 sps:$4 sm:$0xff]  }
 0x144   :  { %2163 = vmatprep.subr.bf16.mxu1 %v3831_v20  ;;  %v3915_v20 = vld [vmem:[#allocation5 + $0x6cc] ss:$16 sps:$4 sm:$0xff]  }
 0x146   :  { %1967 = vmatpush1.bf16.msra.mxu0 %v3826_v21 }
 0x147   :  { %2164 = vmatpush1.bf16.msra.mxu1 %v3829_v22  ;;  %1968 = vmatprep.subr.bf16.mxu0 %v3834_v24  ;;  %v3910_v24 = vld [vmem:[#allocation5 + $0x740] ss:$16 sps:$4 sm:$0xff]  }
 0x148   :  { %2165 = vmatprep.subr.bf16.mxu1 %v3837_v25  ;;  %v3913_v25 = vld [vmem:[#allocation5 + $0x6c8] ss:$16 sps:$4 sm:$0xff]  }
 0x14a   :  { %1969 = vmatpush1.bf16.msra.mxu0 %v3832_v26 }
 0x14b   :  { %2166 = vmatpush1.bf16.msra.mxu1 %v3835_v27  ;;  %1970 = vmatprep.subr.bf16.mxu0 %v3840_v28  ;;  %v3918_v27 = vld [vmem:[#allocation5 + $0x764] ss:$16 sps:$4 sm:$0xff]   ;;  %v3921_v28 = vld [vmem:[#allocation5 + $0x6ec] ss:$16 sps:$4 sm:$0xff]  }
 0x14c   :  { %2167 = vmatprep.subr.bf16.mxu1 %v3843_v29 }
 0x14e   :  { %1971 = vmatpush1.bf16.msra.mxu0 %v3838_v31  ;;  %v3919_v31 = vld [vmem:[#allocation5 + $0x6e8] ss:$16 sps:$4 sm:$0xff]  }
 0x14f   :  { %2168 = vmatpush1.bf16.msra.mxu1 %v3841_v33  ;;  %1972 = vmatprep.subr.bf16.mxu0 %v3846_v34  ;;  %v3924_v33 = vld [vmem:[#allocation5 + $0x784] ss:$16 sps:$4 sm:$0xff]   ;;  %v3927_v34 = vld [vmem:[#allocation5 + $0x70c] ss:$16 sps:$4 sm:$0xff]  }
 0x150   :  { %2169 = vmatprep.subr.bf16.mxu1 %v3849_v36  ;;  %v3922_v36 = vld [vmem:[#allocation5 + $0x780] ss:$16 sps:$4 sm:$0xff]  }
 0x152   :  { %1973 = vmatpush1.bf16.msra.mxu0 %v3844_v15  ;;  %v3925_v15 = vld [vmem:[#allocation5 + $0x708] ss:$16 sps:$4 sm:$0xff]  }
 0x153   :  { %2170 = vmatpush1.bf16.msra.mxu1 %v3847_v38  ;;  %1983 = vmatprep.subr.bf16.mxu0 %v3852_v39  ;;  %v3930_v38 = vld [vmem:[#allocation5 + $0x7a4] ss:$16 sps:$4 sm:$0xff]   ;;  %v3933_v39 = vld [vmem:[#allocation5 + $0x72c] ss:$16 sps:$4 sm:$0xff]  }
 0x154   :  { %2171 = vmatprep.subr.bf16.mxu1 %v3855_v40  ;;  %v3928_v40 = vld [vmem:[#allocation5 + $0x7a0] ss:$16 sps:$4 sm:$0xff]  }
 0x155   :  { %1975 = vmatmul.mubr.bf16.vlgmr.msra.gmra.mrb[0].mxu0 %v196_v41 }
 0x156   :  { %1984 = vmatpush1.bf16.msra.mxu0 %v3850_v42  ;;  %2015 = vmatprep.mubr.bf16.mxu0 %v199_v45  ;;  %v3939_v42 = vld [vmem:[#allocation5 + $0x74c] ss:$16 sps:$4 sm:$0xff]  }
 0x157   :  { %2172 = vmatpush1.bf16.msra.mxu1 %v3853_v43  ;;  %1985 = vmatprep.subr.bf16.mxu0 %v3858_v53  ;;  %v3934_v43 = vld [vmem:[#allocation5 + $0x7c0] ss:$16 sps:$4 sm:$0xff]   ;;  %v3937_v53 = vld [vmem:[#allocation5 + $0x748] ss:$16 sps:$4 sm:$0xff]  }
 0x158   :  { %2173 = vmatprep.subr.bf16.mxu1 %v3861_v44  ;;  %v3942_v44 = vld [vmem:[#allocation5 + $0x7e4] ss:$16 sps:$4 sm:$0xff]  }
 0x15a   :  { %1986 = vmatpush1.bf16.msra.mxu0 %v3856_v46  ;;  %v3940_v46 = vld [vmem:[#allocation5 + $0x7e0] ss:$16 sps:$4 sm:$0xff]  }
 0x15b   :  { %2174 = vmatpush1.bf16.msra.mxu1 %v3859_v48  ;;  %1987 = vmatprep.subr.bf16.mxu0 %v3864_v49  ;;  %v3943_v48 = vld [vmem:[#allocation5 + $0x768] ss:$16 sps:$4 sm:$0xff]   ;;  %v3949_v49 = vld [vmem:[#allocation5 + $0x78c] ss:$16 sps:$4 sm:$0xff]  }
 0x15c   :  { %2175 = vmatprep.subr.bf16.mxu1 %v3867_v50  ;;  %v3972_v50 = vld [vmem:[#allocation8 + $0x4] ss:$8 sps:$4 sm:$0xff]  }
 0x15e   :  { %1988 = vmatpush1.bf16.msra.mxu0 %v3862_v51  ;;  %v198_v51 = vpack.c.bf16 %v4526_v37, %v4526_v37  ;;  %v3976_v37 = vld [vmem:[#allocation8 + $0x20] ss:$8 sps:$4 sm:$0xff]  }
 0x15f   :  { %2176 = vmatpush1.bf16.msra.mxu1 %v3865_v35  ;;  %1989 = vmatprep.subr.bf16.mxu0 %v3870_v52  ;;  %v3947_v35 = vld [vmem:[#allocation5 + $0x788] ss:$16 sps:$4 sm:$0xff]   ;;  %v3970_v52 = vld [vmem:[#allocation8] ss:$8 sps:$4 sm:$0xff]  }
 0x160   :  { %2177 = vmatprep.subr.bf16.mxu1 %v3873_v54  ;;  %v3952_v54 = vld [vmem:[#allocation5 + $0x7ac] ss:$16 sps:$4 sm:$0xff]  }
 0x162   :  { %1990 = vmatpush1.bf16.msra.mxu0 %v3868_v55  ;;  %v3975_v55 = vld [vmem:[#allocation8 + $0x14] ss:$8 sps:$4 sm:$0xff]  }
 0x163   :  { %2178 = vmatpush1.bf16.msra.mxu1 %v3871_v56  ;;  %1991 = vmatprep.subr.bf16.mxu0 %v3876_v57  ;;  %v3950_v56 = vld [vmem:[#allocation5 + $0x7a8] ss:$16 sps:$4 sm:$0xff]   ;;  %v3973_v57 = vld [vmem:[#allocation8 + $0x10] ss:$8 sps:$4 sm:$0xff]  }
 0x164   :  { %2188 = vmatprep.subr.bf16.mxu1 %v3879_v58  ;;  %v3955_v58 = vld [vmem:[#allocation5 + $0x7cc] ss:$16 sps:$4 sm:$0xff]  }
 0x166   :  { %2180 = vmatmul.mubr.bf16.vlgmr.msra.gmra.mrb[4].mxu1 %v196_v41  ;;  %1992 = vmatpush1.bf16.msra.mxu0 %v3874_v59  ;;  %v3936_v41 = vld [vmem:[#allocation5 + $0x7c4] ss:$16 sps:$4 sm:$0xff]   ;;  %v3978_v59 = vld [vmem:[#allocation8 + $0x24] ss:$8 sps:$4 sm:$0xff]  }
 0x167   :  { %2189 = vmatpush1.bf16.msra.mxu1 %v3877_v60  ;;  %1993 = vmatprep.subr.bf16.mxu0 %v3882_v61  ;;  %v3953_v60 = vld [vmem:[#allocation5 + $0x7c8] ss:$16 sps:$4 sm:$0xff]   ;;  %v3958_v61 = vld [vmem:[#allocation5 + $0x7ec] ss:$16 sps:$4 sm:$0xff]  }
 0x168   :  { %2190 = vmatprep.subr.bf16.mxu1 %v3885_v62  ;;  %2220 = vmatprep.mubr.bf16.mxu1 %v199_v45  ;;  %v3945_v45 = vld [vmem:[#allocation5 + $0x76c] ss:$16 sps:$4 sm:$0xff]   ;;  %v3981_v62 = vld [vmem:[#allocation8 + $0x34] ss:$8 sps:$4 sm:$0xff]  }
 0x16a   :  { %1994 = vmatpush1.bf16.msra.mxu0 %v3880_v63  ;;  %v3956_v63 = vld [vmem:[#allocation5 + $0x7e8] ss:$16 sps:$4 sm:$0xff]  }
 0x16b   :  { %2191 = vmatpush1.bf16.msra.mxu1 %v3883_v1  ;;  %1995 = vmatprep.subr.bf16.mxu0 %v3888_v2  ;;  %v3979_v1 = vld [vmem:[#allocation8 + $0x30] ss:$8 sps:$4 sm:$0xff]  }
 0x16c   :  { %2192 = vmatprep.subr.bf16.mxu1 %v3891_v3  ;;  %v3961_v2 = vld [vmem:[#allocation5 + $0x80c] ss:$16 sps:$4 sm:$0xff]   ;;  %v3984_v3 = vld [vmem:[#allocation8 + $0x44] ss:$8 sps:$4 sm:$0xff]  }
 0x16e   :  { %1996 = vmatpush1.bf16.msra.mxu0 %v3886_v4  ;;  %v3959_v4 = vld [vmem:[#allocation5 + $0x808] ss:$16 sps:$4 sm:$0xff]  }
 0x16f   :  { %2193 = vmatpush1.bf16.msra.mxu1 %v3889_v5  ;;  %1997 = vmatprep.subr.bf16.mxu0 %v3894_v6  ;;  %v3964_v5 = vld [vmem:[#allocation5 + $0x82c] ss:$16 sps:$4 sm:$0xff]  }
 0x170   :  { %2194 = vmatprep.subr.bf16.mxu1 %v3897_v7  ;;  %v3982_v6 = vld [vmem:[#allocation8 + $0x40] ss:$8 sps:$4 sm:$0xff]   ;;  %v3987_v7 = vld [vmem:[#allocation8 + $0x54] ss:$8 sps:$4 sm:$0xff]  }
 0x172   :  { %1998 = vmatpush1.bf16.msra.mxu0 %v3892_v8  ;;  %v3962_v8 = vld [vmem:[#allocation5 + $0x828] ss:$16 sps:$4 sm:$0xff]  }
 0x173   :  { %2195 = vmatpush1.bf16.msra.mxu1 %v3895_v9  ;;  %1999 = vmatprep.subr.bf16.mxu0 %v3900_v10  ;;  %v3967_v9 = vld [vmem:[#allocation5 + $0x84c] ss:$16 sps:$4 sm:$0xff]  }
 0x174   :  { %2196 = vmatprep.subr.bf16.mxu1 %v3903_v11  ;;  %v3985_v10 = vld [vmem:[#allocation8 + $0x50] ss:$8 sps:$4 sm:$0xff]  }
 0x175   :  { %v470_v11 = vld [vmem:[#allocation5 + $0x868] sm:$0xff] }
 0x176   :  { %2000 = vmatpush1.bf16.msra.mxu0 %v3898_v12  ;;  %v3990_v12 = vld [vmem:[#allocation8 + $0x64] ss:$8 sps:$4 sm:$0xff]  }
 0x177   :  { %2197 = vmatpush1.bf16.msra.mxu1 %v3901_v13  ;;  %2001 = vmatprep.subr.bf16.mxu0 %v3906_v14  ;;  %v3965_v13 = vld [vmem:[#allocation5 + $0x848] ss:$16 sps:$4 sm:$0xff]   ;;  %v3356_v14 = vcombine.high %v470_v11, %v470_v11 }
 0x178   :  { %2198 = vmatprep.subr.bf16.mxu1 %v3909_v16  ;;  %v3355_v16 = vcombine.low %v470_v11, %v470_v11  ;;  %v4030_v11 = vld [vmem:[#allocation8 + $0x140] ss:$8 sps:$4 sm:$0xff]  }
 0x179   :  { %v4532_v21 = vpop.f32.mrb[0].mxu1 }
 0x17a   :  { %v4534_v22 = vpop.f32.mrb[1].mxu1  ;;  %2002 = vmatpush1.bf16.msra.mxu0 %v3904_v17  ;;  %v3988_v17 = vld [vmem:[#allocation8 + $0x60] ss:$8 sps:$4 sm:$0xff]  }
 0x17b   :  { %2199 = vmatpush1.bf16.msra.mxu1 %v3907_v18  ;;  %v2062_v26 = vpop.f32.mrb[2].mxu1  ;;  %2003 = vmatprep.subr.bf16.mxu0 %v3912_v19  ;;  %v3993_v18 = vld [vmem:[#allocation8 + $0x74] ss:$8 sps:$4 sm:$0xff]   ;;  %v3991_v19 = vld [vmem:[#allocation8 + $0x70] ss:$8 sps:$4 sm:$0xff]  }
 0x17c   :  { %2200 = vmatprep.subr.bf16.mxu1 %v3915_v20  ;;  %v2063_v29 = vpop.f32.mrb[3].mxu1  ;;  %v3996_v20 = vld [vmem:[#allocation8 + $0x84] ss:$8 sps:$4 sm:$0xff]   ;;  %v3997_v26 = vld [vmem:[#allocation8 + $0x90] ss:$8 sps:$4 sm:$0xff]  }
 0x17d   :  { %v4005_v29 = vld [vmem:[#allocation8 + $0xb4] ss:$8 sps:$4 sm:$0xff]  }
 0x17e   :  { %2004 = vmatpush1.bf16.msra.mxu0 %v3910_v24  ;;  %v3994_v24 = vld [vmem:[#allocation8 + $0x80] ss:$8 sps:$4 sm:$0xff]  }
 0x17f   :  { %2201 = vmatpush1.bf16.msra.mxu1 %v3913_v25  ;;  %2005 = vmatprep.subr.bf16.mxu0 %v3918_v27  ;;  %v3999_v25 = vld [vmem:[#allocation8 + $0x94] ss:$8 sps:$4 sm:$0xff]   ;;  %v4002_v27 = vld [vmem:[#allocation8 + $0xa4] ss:$8 sps:$4 sm:$0xff]  }
 0x180   :  { %2202 = vmatprep.subr.bf16.mxu1 %v3921_v28  ;;  %v4000_v28 = vld [vmem:[#allocation8 + $0xa0] ss:$8 sps:$4 sm:$0xff]  }
 0x182   :  { %2006 = vmatpush1.bf16.msra.mxu0 %v3916_v30  ;;  %v4003_v30 = vld [vmem:[#allocation8 + $0xb0] ss:$8 sps:$4 sm:$0xff]  }
 0x183   :  { %2203 = vmatpush1.bf16.msra.mxu1 %v3919_v31  ;;  %2007 = vmatprep.subr.bf16.mxu0 %v3924_v33  ;;  %v4008_v31 = vld [vmem:[#allocation8 + $0xc4] ss:$8 sps:$4 sm:$0xff]   ;;  %v4006_v33 = vld [vmem:[#allocation8 + $0xc0] ss:$8 sps:$4 sm:$0xff]  }
 0x184   :  { %2204 = vmatprep.subr.bf16.mxu1 %v3927_v34  ;;  %v4011_v34 = vld [vmem:[#allocation8 + $0xd4] ss:$8 sps:$4 sm:$0xff]  }
 0x186   :  { %2008 = vmatpush1.bf16.msra.mxu0 %v3922_v36  ;;  %v4009_v36 = vld [vmem:[#allocation8 + $0xd0] ss:$8 sps:$4 sm:$0xff]  }
 0x187   :  { %2205 = vmatpush1.bf16.msra.mxu1 %v3925_v15  ;;  %2009 = vmatprep.subr.bf16.mxu0 %v3930_v38  ;;  %v4012_v15 = vld [vmem:[#allocation8 + $0xe0] ss:$8 sps:$4 sm:$0xff]   ;;  %v4017_v38 = vld [vmem:[#allocation8 + $0xf4] ss:$8 sps:$4 sm:$0xff]  }
 0x188   :  { %2206 = vmatprep.subr.bf16.mxu1 %v3933_v39  ;;  %v4015_v39 = vld [vmem:[#allocation8 + $0xf0] ss:$8 sps:$4 sm:$0xff]  }
 0x18a   :  { %2010 = vmatpush1.bf16.msra.mxu0 %v3928_v40  ;;  %v4020_v40 = vld [vmem:[#allocation8 + $0x104] ss:$8 sps:$4 sm:$0xff]  }
 0x18b   :  { %2207 = vmatpush1.bf16.msra.mxu1 %v3931_v32  ;;  %2011 = vmatprep.subr.bf16.mxu0 %v3936_v41  ;;  %v4066_v32 = vld [vmem:[#allocation11 + $0x40] sm:$0xff]  }
 0x18c   :  { %2208 = vmatprep.subr.bf16.mxu1 %v3939_v42  ;;  %v4067_v41 = vld [vmem:[#allocation11] sm:$0xff]   ;;  %v4068_v42 = vld [vmem:[#allocation11 + $0x48] sm:$0xff]  }
 0x18e   :  { %2012 = vmatpush1.bf16.msra.mxu0 %v3934_v43  ;;  %v4069_v43 = vld [vmem:[#allocation11 + $0x8] sm:$0xff]  }
 0x18f   :  { %2209 = vmatpush1.bf16.msra.mxu1 %v3937_v53  ;;  %2013 = vmatprep.subr.bf16.mxu0 %v3942_v44  ;;  %v4070_v53 = vld [vmem:[#allocation11 + $0x50] sm:$0xff]  }
 0x190   :  { %2210 = vmatprep.subr.bf16.mxu1 %v3945_v45  ;;  %v4071_v44 = vld [vmem:[#allocation11 + $0x10] sm:$0xff]   ;;  %v4072_v45 = vld [vmem:[#allocation11 + $0x58] sm:$0xff]  }
 0x192   :  { %2014 = vmatpush1.bf16.msra.mxu0 %v3940_v46  ;;  %v4073_v46 = vld [vmem:[#allocation11 + $0x18] sm:$0xff]  }
 0x193   :  { %2211 = vmatpush1.bf16.msra.mxu1 %v3943_v48  ;;  %2674 = vmatprep.subr.bf16.mxu0 %v3972_v50  ;;  %v4074_v48 = vld [vmem:[#allocation11 + $0x60] sm:$0xff]   ;;  %v4076_v50 = vld [vmem:[#allocation11 + $0x68] sm:$0xff]  }
 0x194   :  { %2212 = vmatprep.subr.bf16.mxu1 %v3949_v49  ;;  %v4075_v49 = vld [vmem:[#allocation11 + $0x20] sm:$0xff]  }
 0x195   :  { %2016 = vmatmul.mubr.bf16.vlgmr.msra.gmra.mrb[0].mxu0 %v198_v51 }
 0x196   :  { %2675 = vmatpush1.bf16.msra.mxu0 %v3970_v52  ;;  %v4544_v52 = vld [vmem:[#allocation7] sm:$0xf] }
 0x197   :  { %2213 = vmatpush1.bf16.msra.mxu1 %v3947_v35  ;;  %2676 = vmatprep.subr.bf16.mxu0 %v3975_v55  ;;  %v475_v35 = vsub.s32 0, %v4502_v47 }
 0x198   :  { %2214 = vmatprep.subr.bf16.mxu1 %v3952_v54  ;;  %v479_v54 = vsub.s32 1, %v4502_v47 }
 0x199   :  { %v476_v55 = vrot.slane %v4544_v52, %v475_v35 }
 0x19a   :  { %2677 = vmatpush1.bf16.msra.mxu0 %v3973_v57 }
 0x19b   :  { %2215 = vmatpush1.bf16.msra.mxu1 %v3950_v56  ;;  %2678 = vmatprep.subr.bf16.mxu0 %v3978_v59  ;;  %v480_v56 = vrot.slane %v4544_v52, %v479_v54 }
 0x19c   :  { %2216 = vmatprep.subr.bf16.mxu1 %v3955_v58 }
 0x19e   :  { %2679 = vmatpush1.bf16.msra.mxu0 %v3976_v37 }
 0x19f   :  { %2217 = vmatpush1.bf16.msra.mxu1 %v3953_v60  ;;  %2680 = vmatprep.subr.bf16.mxu0 %v3981_v62 }
 0x1a0   :  { %2218 = vmatprep.subr.bf16.mxu1 %v3958_v61 }
 0x1a2   :  { %2681 = vmatpush1.bf16.msra.mxu0 %v3979_v1 }
 0x1a3   :  { %2219 = vmatpush1.bf16.msra.mxu1 %v3956_v63  ;;  %2682 = vmatprep.subr.bf16.mxu0 %v3984_v3 }
 0x1a4   :  { %2229 = vmatprep.subr.bf16.mxu1 %v3961_v2 }
 0x1a6   :  { %2221 = vmatmul.mubr.bf16.vlgmr.msra.gmra.mrb[4].mxu1 %v198_v51  ;;  %2683 = vmatpush1.bf16.msra.mxu0 %v3982_v6  ;;  %v4077_v51 = vld [vmem:[#allocation11 + $0x28] sm:$0xff]   ;;  %v4023_v6 = vld [vmem:[#allocation8 + $0x114] ss:$8 sps:$4 sm:$0xff]  }
 0x1a7   :  { %2230 = vmatpush1.bf16.msra.mxu1 %v3959_v4  ;;  %2261 = vmatprep.mubr.bf16.mxu1 %v4338_v0  ;;  %v1855_v0 = vsel %vm1847_vm0, %v3355_v16, 0  ;;  %v4018_v4 = vld [vmem:[#allocation8 + $0x100] ss:$8 sps:$4 sm:$0xff]   ;;  %v4038_v16 = vld [vmem:[#allocation8 + $0x164] ss:$8 sps:$4 sm:$0xff]  }
 0x1a8   :  { %2231 = vmatprep.subr.bf16.mxu1 %v3964_v5  ;;  %2684 = vmatprep.subr.bf16.mxu0 %v3987_v7  ;;  %v4021_v7 = vld [vmem:[#allocation8 + $0x110] ss:$8 sps:$4 sm:$0xff]  }
 0x1aa   :  { %2685 = vmatpush1.bf16.msra.mxu0 %v3985_v10  ;;  %v4029_v10 = vld [vmem:[#allocation8 + $0x134] ss:$8 sps:$4 sm:$0xff]  }
 0x1ab   :  { %2232 = vmatpush1.bf16.msra.mxu1 %v3962_v8  ;;  %2686 = vmatprep.subr.bf16.mxu0 %v3990_v12  ;;  %v4026_v8 = vld [vmem:[#allocation8 + $0x124] ss:$8 sps:$4 sm:$0xff]   ;;  %v4035_v12 = vld [vmem:[#allocation8 + $0x154] ss:$8 sps:$4 sm:$0xff]  }
 0x1ac   :  { %2233 = vmatprep.subr.bf16.mxu1 %v3967_v9  ;;  %v4024_v9 = vld [vmem:[#allocation8 + $0x120] ss:$8 sps:$4 sm:$0xff]  }
 0x1ae   :  { %2687 = vmatpush1.bf16.msra.mxu0 %v3988_v17 }
 0x1af   :  { %2234 = vmatpush1.bf16.msra.mxu1 %v3965_v13  ;;  %2688 = vmatprep.subr.bf16.mxu0 %v3993_v18  ;;  %v487_v13 = vsub.s32 3, %v4502_v47 }
 0x1b0   :  { %3359 = vmatprep.subr.msk.bf16.mxu1 %vm1847_vm0, %v3356_v14  ;;  %v4033_v14 = vld [vmem:[#allocation8 + $0x150] ss:$8 sps:$4 sm:$0xff]  }
 0x1b1   :  { %v488_v17 = vrot.slane %v4544_v52, %v487_v13 }
 0x1b2   :  { %2689 = vmatpush1.bf16.msra.mxu0 %v3991_v19 }
 0x1b3   :  { %2236 = vmatpush1.bf16.msra.mxu1 %v1855_v0  ;;  %2690 = vmatprep.subr.bf16.mxu0 %v3996_v20  ;;  %v4036_v0 = vld [vmem:[#allocation8 + $0x160] ss:$8 sps:$4 sm:$0xff]   ;;  %v4041_v20 = vld [vmem:[#allocation8 + $0x174] ss:$8 sps:$4 sm:$0xff]  }
 0x1b4   :  { %3451 = vmatprep.subr.bf16.mxu1 %v4066_v32  ;;  %v483_v32 = vsub.s32 2, %v4502_v47  ;;  %v4083_v47 = vld [vmem:[%s4618_s7 + $0x8] sm:$0xff]  }
 0x1b6   :  { %3360 = vmatmul.mubr.msk.bf16.vlgmr.msra.gmra.mrb[4].mxu1 %vm1843_vm1, %v4498_v23  ;;  %2691 = vmatpush1.bf16.msra.mxu0 %v3994_v24  ;;  %v4014_v23 = vld [vmem:[#allocation8 + $0xe4] ss:$8 sps:$4 sm:$0xff]  }
 0x1b7   :  { %2692 = vmatprep.subr.bf16.mxu0 %v3999_v25  ;;  %3452 = vmatpush3.bf16.msra.mxu1 %v4067_v41  ;;  %v4059_v41 = vld [vmem:[#allocation8 + $0x1d4] ss:$8 sps:$4 sm:$0xff]  }
 0x1b8   :  { %3453 = vmatprep.subr.bf16.mxu1 %v4068_v42  ;;  %v4057_v42 = vld [vmem:[#allocation8 + $0x1d0] ss:$8 sps:$4 sm:$0xff]  }
 0x1ba   :  { %2693 = vmatpush1.bf16.msra.mxu0 %v3997_v26 }
 0x1bb   :  { %2694 = vmatprep.subr.bf16.mxu0 %v4002_v27  ;;  %3454 = vmatpush3.bf16.msra.mxu1 %v4069_v43  ;;  %v484_v43 = vrot.slane %v4544_v52, %v483_v32  ;;  %v4081_v52 = vld [vmem:[#allocation11 + $0x38] sm:$0xff]  }
 0x1bc   :  { %3455 = vmatprep.subr.bf16.mxu1 %v4070_v53  ;;  %v4062_v53 = vld [vmem:[#allocation8 + $0x1e4] ss:$8 sps:$4 sm:$0xff]  }
 0x1be   :  { %2695 = vmatpush1.bf16.msra.mxu0 %v4000_v28  ;;  %v4039_v28 = vld [vmem:[#allocation8 + $0x170] ss:$8 sps:$4 sm:$0xff]  }
 0x1bf   :  { %2696 = vmatprep.subr.bf16.mxu0 %v4005_v29  ;;  %3456 = vmatpush3.bf16.msra.mxu1 %v4071_v44  ;;  %v4044_v29 = vld [vmem:[#allocation8 + $0x184] ss:$8 sps:$4 sm:$0xff]   ;;  %v4060_v44 = vld [vmem:[#allocation8 + $0x1e0] ss:$8 sps:$4 sm:$0xff]  }
 0x1c0   :  { %3457 = vmatprep.subr.bf16.mxu1 %v4072_v45 }
 0x1c2   :  { %2697 = vmatpush1.bf16.msra.mxu0 %v4003_v30 }
 0x1c3   :  { %2698 = vmatprep.subr.bf16.mxu0 %v4008_v31  ;;  %3458 = vmatpush3.bf16.msra.mxu1 %v4073_v46  ;;  %v4042_v31 = vld [vmem:[#allocation8 + $0x180] ss:$8 sps:$4 sm:$0xff]   ;;  %v4065_v46 = vld [vmem:[#allocation8 + $0x1f4] ss:$8 sps:$4 sm:$0xff]  }
 0x1c4   :  { %3459 = vmatprep.subr.bf16.mxu1 %v4074_v48  ;;  %v4063_v48 = vld [vmem:[#allocation8 + $0x1f0] ss:$8 sps:$4 sm:$0xff]  }
 0x1c6   :  { %2699 = vmatpush1.bf16.msra.mxu0 %v4006_v33  ;;  %v4047_v33 = vld [vmem:[#allocation8 + $0x194] ss:$8 sps:$4 sm:$0xff]  }
 0x1c7   :  { %2700 = vmatprep.subr.bf16.mxu0 %v4011_v34  ;;  %3460 = vmatpush3.bf16.msra.mxu1 %v4075_v49  ;;  %v4045_v34 = vld [vmem:[#allocation8 + $0x190] ss:$8 sps:$4 sm:$0xff]  }
 0x1c8   :  { %3461 = vmatprep.subr.bf16.mxu1 %v4076_v50 }
 0x1ca   :  { %2701 = vmatpush1.bf16.msra.mxu0 %v4009_v36  ;;  %v4050_v36 = vld [vmem:[#allocation8 + $0x1a4] ss:$8 sps:$4 sm:$0xff]  }
 0x1cb   :  { %2702 = vmatprep.subr.bf16.mxu0 %v4014_v23  ;;  %3462 = vmatpush3.bf16.msra.mxu1 %v4077_v51  ;;  %v4048_v23 = vld [vmem:[#allocation8 + $0x1a0] ss:$8 sps:$4 sm:$0xff]   ;;  %v4078_v51 = vld [vmem:[#allocation11 + $0x70] sm:$0xff]  }
 0x1cc   :  { %3463 = vmatprep.subr.bf16.mxu1 %v4078_v51 }
 0x1ce   :  { %2703 = vmatpush1.bf16.msra.mxu0 %v4012_v15  ;;  %v4053_v15 = vld [vmem:[#allocation8 + $0x1b4] ss:$8 sps:$4 sm:$0xff]  }
 0x1cf   :  { %2704 = vmatprep.subr.bf16.mxu0 %v4017_v38  ;;  %v4051_v38 = vld [vmem:[#allocation8 + $0x1b0] ss:$8 sps:$4 sm:$0xff]  }
 0x1d2   :  { %2705 = vmatpush1.bf16.msra.mxu0 %v4015_v39  ;;  %v4056_v39 = vld [vmem:[#allocation8 + $0x1c4] ss:$8 sps:$4 sm:$0xff]  }
 0x1d3   :  { %2715 = vmatprep.subr.bf16.mxu0 %v4020_v40  ;;  %v4054_v40 = vld [vmem:[#allocation8 + $0x1c0] ss:$8 sps:$4 sm:$0xff]  }
 0x268   :  { %v2017_v57 = vpop.f32.mrb[0].mxu0 }
 0x269   :  { %v3502_v58 = vadd.f32 %v2017_v57, %v476_v55  ;;  %v2019_v59 = vpop.f32.mrb[1].mxu0  ;;  %v4079_v55 = vld [vmem:[#allocation11 + $0x30] sm:$0xff]   ;;  %v4340_v57 = vmov 0.0  }
 0x26a   :  { %v3504_v60 = vadd.f32 %v2019_v59, %v480_v56  ;;  %v2021_v37 = vpop.f32.mrb[2].mxu0  ;;  %3464 = vmatpush3.bf16.msra.mxu1 %v4079_v55  ;;  %v4080_v56 = vld [vmem:[#allocation11 + $0x78] sm:$0xff]  }
 0x26b   :  { %v3503_v61 = vadd.f32 %v3502_v58, %v4532_v21  ;;  %v2022_v62 = vpop.f32.mrb[3].mxu0  ;;  %v4027_v21 = vld [vmem:[#allocation8 + $0x130] ss:$8 sps:$4 sm:$0xff]   ;;  %3465 = vmatprep.subr.bf16.mxu1 %v4080_v56  ;;  %v2342_v58 = vld [vmem:[#allocation10] sm:$0x3] }
 0x26c   :  { %v3505_v63 = vadd.f32 %v3504_v60, %v4534_v22  ;;  %v4032_v22 = vld [vmem:[#allocation8 + $0x144] ss:$8 sps:$4 sm:$0xff]   ;;  %v2347_v59 = vrot.slane %v2342_v58, %v475_v35  ;;  %v2351_v60 = vrot.slane %v2342_v58, %v479_v54  ;;  %v4085_v54 = vld [vmem:[%s4618_s7 + $0x18] sm:$0xff]  }
 0x26d   :  { %v2270_v1 = vmax.f32 %v3503_v61, 0.0  ;;  %v4084_v35 = vld [vmem:[%s4618_s7 + $0x10] sm:$0xff]  }
 0x26e   :  { %v2271_v2 = vmax.f32 %v3505_v63, 0.0  ;;  %3466 = vmatpush3.bf16.msra.mxu1 %v4081_v52 }
 0x26f   :  { %v2274_v5 = vpack.c.bf16 %v2270_v1, %v2270_v1  ;;  %3482 = vmatprep.subr.bf16.mxu1 %v4340_v57 }
 0x270   :  { %v2275_v3 = vpack.c.bf16 %v2271_v2, %v2271_v2 }
 0x272   :  { %2706 = vmatprep.mubr.bf16.mxu0 %v2275_v3 }
 0x273   :  { %2707 = vmatmul.mubr.bf16.vlgmr.msra.gmra.mrb[4].mxu0 %v2274_v5 }
 0x274   :  { %2716 = vmatpush1.bf16.msra.mxu0 %v4018_v4 }
 0x275   :  { %2717 = vmatprep.subr.bf16.mxu0 %v4023_v6  ;;  %v4082_v6 = vld [vmem:[%s4618_s7] sm:$0xff]  }
 0x278   :  { %2718 = vmatpush1.bf16.msra.mxu0 %v4021_v7 }
 0x279   :  { %2719 = vmatprep.subr.bf16.mxu0 %v4026_v8  ;;  %v4086_v8 = vld [vmem:[%s4618_s7 + $0x20] sm:$0xff]  }
 0x27c   :  { %2720 = vmatpush1.bf16.msra.mxu0 %v4024_v9  ;;  %v4087_v9 = vld [vmem:[%s4618_s7 + $0x28] sm:$0xff]  }
 0x27d   :  { %2721 = vmatprep.subr.bf16.mxu0 %v4029_v10  ;;  %v4088_v10 = vld [vmem:[%s4618_s7 + $0x30] sm:$0xff]  }
 0x280   :  { %2722 = vmatpush1.bf16.msra.mxu0 %v4027_v21  ;;  %v4089_v21 = vld [vmem:[%s4618_s7 + $0x38] sm:$0xff]  }
 0x281   :  { %2723 = vmatprep.subr.bf16.mxu0 %v4032_v22 }
 0x284   :  { %2724 = vmatpush1.bf16.msra.mxu0 %v4030_v11  ;;  %v3425_v11 = vld [vmem:[#allocation13] ss:$0 sm:$0xff] }
 0x285   :  { %2725 = vmatprep.subr.bf16.mxu0 %v4035_v12 }
 0x288   :  { %2726 = vmatpush1.bf16.msra.mxu0 %v4033_v14 }
 0x289   :  { %v2263_v18 = vpop.f32.mrb[4].mxu1  ;;  %2727 = vmatprep.subr.bf16.mxu0 %v4038_v16 }
 0x28a   :  { %v2265_v19 = vpop.f32.mrb[5].mxu1  ;;  %v3506_v45 = vadd.f32 %v2263_v18, %v484_v43 }
 0x28b   :  { %v3507_v24 = vadd.f32 %v2265_v19, %v488_v17  ;;  %v2267_v25 = vpop.f32.mrb[6].mxu1 }
 0x28c   :  { %v2268_v26 = vpop.f32.mrb[7].mxu1  ;;  %2728 = vmatpush1.bf16.msra.mxu0 %v4036_v0  ;;  %v2272_v49 = vmax.f32 %v3506_v45, 0.0 }
 0x28d   :  { %v2273_v27 = vmax.f32 %v3507_v24, 0.0  ;;  %2729 = vmatprep.subr.bf16.mxu0 %v4041_v20 }
 0x28e   :  { %v2276_v50 = vpack.c.bf16 %v2272_v49, %v2272_v49 }
 0x28f   :  { %v2277_v30 = vpack.c.bf16 %v2273_v27, %v2273_v27 }
 0x290   :  { %2730 = vmatpush1.bf16.msra.mxu0 %v4039_v28 }
 0x291   :  { %2747 = vmatprep.mubr.bf16.mxu0 %v2277_v30  ;;  %2731 = vmatprep.subr.bf16.mxu0 %v4044_v29 }
 0x294   :  { %2732 = vmatpush1.bf16.msra.mxu0 %v4042_v31 }
 0x295   :  { %2733 = vmatprep.subr.bf16.mxu0 %v4047_v33 }
 0x298   :  { %2734 = vmatpush1.bf16.msra.mxu0 %v4045_v34 }
 0x299   :  { %2735 = vmatprep.subr.bf16.mxu0 %v4050_v36 }
 0x29c   :  { %2736 = vmatpush1.bf16.msra.mxu0 %v4048_v23 }
 0x29d   :  { %2737 = vmatprep.subr.bf16.mxu0 %v4053_v15 }
 0x2a0   :  { %2738 = vmatpush1.bf16.msra.mxu0 %v4051_v38 }
 0x2a1   :  { %2739 = vmatprep.subr.bf16.mxu0 %v4056_v39 }
 0x2a4   :  { %2740 = vmatpush1.bf16.msra.mxu0 %v4054_v40 }
 0x2a5   :  { %2741 = vmatprep.subr.bf16.mxu0 %v4059_v41 }
 0x2a8   :  { %2742 = vmatpush1.bf16.msra.mxu0 %v4057_v42 }
 0x2a9   :  { %2743 = vmatprep.subr.bf16.mxu0 %v4062_v53 }
 0x2ac   :  { %2744 = vmatpush1.bf16.msra.mxu0 %v4060_v44 }
 0x2ad   :  { %2745 = vmatprep.subr.bf16.mxu0 %v4065_v46 }
 0x2b0   :  { %2746 = vmatpush1.bf16.msra.mxu0 %v4063_v48 }
 0x2b3   :  { %2748 = vmatmul.mubr.bf16.vlgmr.msra.gmra.mrb[4].mxu0 %v2276_v50 }
 0x386   :  { %v2749_v37 = vpop.f32.mrb[4].mxu0 }
 0x387   :  { %v3508_v61 = vadd.f32 %v2749_v37, %v2347_v59  ;;  %v2751_v62 = vpop.f32.mrb[5].mxu0 }
 0x388   :  { %v3509_v63 = vadd.f32 %v2751_v62, %v2351_v60  ;;  %v2753_v1 = vpop.f32.mrb[6].mxu0 }
 0x389   :  { %v2756_v2 = vmax.f32 %v3508_v61, 0.0  ;;  %v2754_v3 = vpop.f32.mrb[7].mxu0 }
 0x38a   :  { %v2757_v4 = vmax.f32 %v3509_v63, 0.0 }
 0x38b   :  { %v2758_v7 = vpack.c.bf16 %v2756_v2, %v2756_v2 }
 0x38c   :  { %v2759_v5 = vpack.c.bf16 %v2757_v4, %v2757_v4 }
 0x38e   :  { %2927 = vmatprep.mubr.bf16.mxu1 %v2759_v5 }
 0x38f   :  { %2928 = vmatmul.mubr.bf16.vlgmr.msra.gmra.mrb[8].mxu1 %v2758_v7 }
 0x390   :  { %3483 = vmatpush3.bf16.msra.mxu1 %v4082_v6  ;;  %3498 = vmatprep.mubr.msk.bf16.mxu1 %vm4341_vm2, %v4340_v57 }
 0x391   :  { %3484 = vmatprep.subr.bf16.mxu1 %v4340_v57 }
 0x394   :  { %3485 = vmatpush3.bf16.msra.mxu1 %v4083_v47 }
 0x395   :  { %3486 = vmatprep.subr.bf16.mxu1 %v4340_v57 }
 0x398   :  { %3487 = vmatpush3.bf16.msra.mxu1 %v4084_v35 }
 0x399   :  { %3488 = vmatprep.subr.bf16.mxu1 %v4340_v57 }
 0x39c   :  { %3489 = vmatpush3.bf16.msra.mxu1 %v4085_v54 }
 0x39d   :  { %3490 = vmatprep.subr.bf16.mxu1 %v4340_v57 }
 0x3a0   :  { %3491 = vmatpush3.bf16.msra.mxu1 %v4086_v8 }
 0x3a1   :  { %3492 = vmatprep.subr.bf16.mxu1 %v4340_v57 }
 0x3a4   :  { %3493 = vmatpush3.bf16.msra.mxu1 %v4087_v9 }
 0x3a5   :  { %3494 = vmatprep.subr.bf16.mxu1 %v4340_v57 }
 0x3a8   :  { %3495 = vmatpush3.bf16.msra.mxu1 %v4088_v10 }
 0x3a9   :  { %3496 = vmatprep.subr.bf16.mxu1 %v4340_v57 }
 0x3ac   :  { %3497 = vmatpush3.bf16.msra.mxu1 %v4089_v21 }
 0x462   :  { %v3467_v22 = vpop.f32.mrb[8].mxu1 }
 0x463   :  { %v3468_v12 = vpop.f32.mrb[9].mxu1 }
 0x464   :  { %v3469_v13 = vadd.f32 %v3468_v12, %v3467_v22  ;;  %v3470_v14 = vpop.f32.mrb[10].mxu1 }
 0x465   :  { %v3471_v16 = vpop.f32.mrb[11].mxu1 }
 0x466   :  { %v2930_v17 = vadd.f32 %v3469_v13, %v3425_v11 }
 0x468   :  { %v2935_v18 = vmax.f32 %v2930_v17, 0.0 }
 0x46a   :  { %v2937_v0 = vpack.c.bf16 %v2935_v18, %v2935_v18  ;;  %2936 = vst [vmem:[#allocation16] sm:$0x3] %v2935_v18 }
 0x46c   :  { %3499 = vmatmul.mubr.bf16.vlgmr.msra.gmra.mrb[12].mxu1 %v2937_v0 }
 0x46d   :  { %4277 = shalt.err (!%p4274_p12)
}
 0x46e   :  { %s4278_s18 = scalar_lea.hbm %s4620_s9, 32 }
 0x46f   :  { %p4279_p13 = scmp.ne.s32.totalorder %s4620_s9, %s4278_s18  ;;  %p4282_p0 = scmp.lt.u32.totalorder %s4278_s18, %s4620_s9 }
 0x471   :  { %p4284_p1 = pnand %p4282_p0, %p4279_p13 }
 0x473   :  { %4287 = shalt.err (!%p4284_p1)
}
 0x474   :  { %3060 = dma.vmem_to_hbm [thread:$0]  %s3058_s15, 32, %s4620_s9, [#allocation4]   ;;  %v3442_v19 = vld [vmem:[#allocation14] ss:$0 sm:$0xff]  ;;  %vm3049_vm3 = vcmask 58368  }
 0x475   :  { %s4343_s5 = smov [#allocation17]  }
 0x476   :  { %s3067_s8 = sshll.u32 %s4343_s5, 4  ;;  %s3068_s8 = int_to_ptr.vmem [resolvable:$true] %s3067_s8 }
 0x477   :  { %s4288_s2 = scalar_lea.vmem %s3068_s8, 32  ;;  %p4293_p3 = scmp.lt.s32.totalorder %s3068_s8, %s3068_s8 }
 0x478   :  { %p4289_p2 = scmp.ne.s32.totalorder %s3068_s8, %s4288_s2  ;;  %p4294_p4 = scmp.lt.s32.totalorder %s4288_s2, %s4288_s2 }
 0x47a   :  { %p4295_p5 = por %p4294_p4, %p4293_p3 }
 0x47c   :  { %p4296_p6 = pnand %p4295_p5, %p4289_p2 }
 0x53f   :  { %v3043_v20 = vpop.f32.mrb[12].mxu1 }
 0x540   :  { %v3044_v24 = vadd.f32 %v3442_v19, %v3043_v20  ;;  %v3500_v25 = vpop.f32.mrb[13].mxu1 }
 0x541   :  { %v3046_v26 = vpop.f32.mrb[14].mxu1 }
 0x542   :  { %v3501_v27 = vpop.f32.mrb[15].mxu1  ;;  %3050 = vst.msk [vmem:[#allocation17] sm:$0x3] %vm3049_vm3, %v3044_v24 }
 0x543   :  { %4299 = shalt.err (!%p4296_p6)
}
 0x544   :  { %s4300_s21 = scalar_lea.hbm %s4621_s10, 32 }
 0x545   :  { %p4301_p7 = scmp.ne.s32.totalorder %s4621_s10, %s4300_s21  ;;  %p4304_p8 = scmp.lt.u32.totalorder %s4300_s21, %s4621_s10 }
 0x547   :  { %p4306_p9 = pnand %p4304_p8, %p4301_p7 }
 0x549   :  { %4309 = shalt.err (!%p4306_p9)
}
 0x54a   :  { %3070 = dma.vmem_to_hbm [thread:$0]  %s3068_s8, 32, %s4621_s10, [#allocation18]  }
 0x54b   :  { %4320 = dma.done.wait [#allocation4], 32  }
 0x54c   :  { %4321 = vsyncadd [#allocation4], 4294967264 }
 0x54d   :  { %4322 = dma.done.wait [#allocation18], 32  }
 0x54e   :  { %4323 = vsyncadd [#allocation18], 4294967264 }
 0x54f   :  { %3077 = vsyncpa [#allocation3], 1 }
 0x550   :  { %3078 = vsyncpa [#allocation6], 1 }
 0x551   :  { %3079 = vsyncpa [#allocation9], 1 }
 0x552   :  { %3080 = vsyncpa [#allocation12], 1 }
 0x553   :  { %3081 = vsyncpa [#allocation15], 1 }
 0x554   :  { %3082 = vsyncpa [#allocation4], 1 }
 0x555   :  { %3083 = vsyncpa [#allocation18], 1 }

</bundles_post_ra>
